<compile_context>
chip_gen: v7x
topology: tpu7x:2x2x1
jax: 0.10.0
libtpu: 0.0.40
codegen_flags: <defaults>
</compile_context>

<pallas_src>
import jax
import jax.numpy as jnp
from jax.experimental import pallas as pl
from jax.experimental.pallas import tpu as pltpu

NUM_NODES_PER_GRAPH = 52    # G: nodes per graph (sublane dim of each block)
FEAT_WINDOW = 480           # width of the narrowed feature window
NUM_CLASSES = 21
CLASS_PAD = 128             # lane-dense padded logits width


def _head_kernel(x_ref, m_ref, w_ref, b_ref, out_ref, pooled_ref):
    # x_ref:      (TB, G, Fc) f32  raw node features, one feature chunk
    # m_ref:      (1, 1, Fc)  f32  masked-mean vector for this chunk (1/480 in window, 0 outside)
    # w_ref:      (G, 128)    f32  zero-padded linear weight
    # b_ref:      (1, 128)    f32  zero-padded linear bias
    # out_ref:    (TB, 128)   f32  zero-padded logits (lane-dense store)
    # pooled_ref: (TB, G)     f32  scratch accumulator, persists across feature chunks
    k = pl.program_id(1)

    @pl.when(k == 0)
    def _():
        pooled_ref[...] = jnp.zeros_like(pooled_ref)

    # Fused narrow + AdaptiveAvgPool1d(1): masked partial mean over this chunk's lanes.
    pooled_ref[...] += jnp.sum(x_ref[...] * m_ref[...], axis=-1)

    @pl.when(k == pl.num_programs(1) - 1)
    def _():
        out_ref[...] = (
            jnp.dot(pooled_ref[...], w_ref[...], preferred_element_type=jnp.float32)
            + b_ref[...]
        )


def inception_train_forward(x, w, b, *, tile_b=None):
    """x: (N, F) node features with F in {500, 960}; w: (52, 21); b: (21,)."""
    n_nodes, f_in = x.shape
    if f_in == 500:
        start = 20
        fc = f_in                               # single full-width chunk (== full array dim)
        read_start = 0
    elif f_in == 960:
        start = 160
        fc = 128                                # 128-lane chunks; only [128, 640) is DMA'd
        read_start = (start // fc) * fc         # 128
    else:
        raise ValueError("x.shape[1] must be 500 or 960")
    if n_nodes % NUM_NODES_PER_GRAPH != 0:
        raise ValueError("number of nodes must be a multiple of 52")

    # Chunking of the feature window.
    read_end = read_start + (-(-(start + FEAT_WINDOW - read_start) // fc)) * fc
    n_chunks = (read_end - read_start) // fc    # 1 for F=500, 4 for F=960
    chunk_off = read_start // fc                # 0 for F=500, 1 for F=960

    batch = n_nodes // NUM_NODES_PER_GRAPH
    # Regrouping the leading dim is free (no column-slice copy, no jnp.pad of x).
    x3d = x.reshape(batch, NUM_NODES_PER_GRAPH, f_in).astype(jnp.float32)

    if tile_b is None:
        tile_b = min(batch, 128)
    grid = (pl.cdiv(batch, tile_b), n_chunks)

    # Masked-mean vector over the *read* window: fuses the column narrow and the 1/480
    # pooling scale; columns outside [start, start+480) (incl. the [128,160) alignment
    # slack for F=960) contribute exactly 0.
    mask_cols = n_chunks * fc
    mask = (
        jnp.zeros((1, 1, mask_cols), jnp.float32)
        .at[0, 0, start - read_start:start - read_start + FEAT_WINDOW]
        .set(1.0 / FEAT_WINDOW)
    )

    # Zero-pad the tiny linear weights to a lane-dense 128-wide output.
    w_pad = jnp.zeros((NUM_NODES_PER_GRAPH, CLASS_PAD), jnp.float32).at[:, :NUM_CLASSES].set(
        w.astype(jnp.float32))
    b_pad = jnp.zeros((1, CLASS_PAD), jnp.float32).at[0, :NUM_CLASSES].set(
        b.astype(jnp.float32))

    out_padded = pl.pallas_call(
        _head_kernel,
        grid=grid,
        in_specs=[
            pl.BlockSpec((tile_b, NUM_NODES_PER_GRAPH, fc),
                         lambda i, k: (i, 0, k + chunk_off)),
            pl.BlockSpec((1, 1, fc), lambda i, k: (0, 0, k)),
            pl.BlockSpec((NUM_NODES_PER_GRAPH, CLASS_PAD), lambda i, k: (0, 0)),
            pl.BlockSpec((1, CLASS_PAD), lambda i, k: (0, 0)),
        ],
        out_specs=pl.BlockSpec((tile_b, CLASS_PAD), lambda i, k: (i, 0)),
        out_shape=jax.ShapeDtypeStruct((batch, CLASS_PAD), jnp.float32),
        scratch_shapes=[pltpu.VMEM((tile_b, NUM_NODES_PER_GRAPH), jnp.float32)],
        compiler_params=pltpu.CompilerParams(
            # batch tiles shard across TensorCores; feature chunks are a reduction (last).
            dimension_semantics=("parallel", "arbitrary"),
            vmem_limit_bytes=48 * 1024 * 1024,
        ),
    )(x3d, mask, w_pad, b_pad)

    out_flat = out_padded[:, :NUM_CLASSES]
    x4 = jnp.argmax(out_flat, axis=1)            # torch.argmax semantics (first max)
    # torch module also computes F.log_softmax(out_flat, dim=1) but never returns it.
    return out_flat, x4, out_flat


def _reference(x, w, b):
    f_in = x.shape[1]
    start = 20 if f_in == 500 else 160
    xs = x[:, start:start + FEAT_WINDOW]
    x3d = xs.reshape(-1, NUM_NODES_PER_GRAPH, FEAT_WINDOW)
    pooled = jnp.mean(x3d, axis=-1)
    logits = jnp.dot(pooled, w, precision=jax.lax.Precision.HIGHEST) + b
    return logits, jnp.argmax(logits, axis=1)


def _check(x, w, b, **kw):
    out_flat, x4, out_flat2 = inception_train_forward(x, w, b, **kw)
    jax.block_until_ready((out_flat, x4, out_flat2))

    ref_logits, ref_arg = _reference(x, w, b)
    num_graphs = ref_logits.shape[0]
    assert out_flat.shape == (num_graphs, NUM_CLASSES)
    assert out_flat2.shape == (num_graphs, NUM_CLASSES)
    assert x4.shape == (num_graphs,)
    assert jnp.allclose(out_flat, ref_logits, atol=2e-4, rtol=2e-4), (
        float(jnp.max(jnp.abs(out_flat - ref_logits))))
    # argmax check, robust against numerical near-ties between top-2 logits.
    top2 = jnp.sort(ref_logits, axis=1)[:, -2:]
    gap = top2[:, 1] - top2[:, 0]
    ok = jnp.where(gap > 1e-3, x4 == ref_arg.astype(x4.dtype), True)
    assert bool(jnp.all(ok))


if __name__ == "__main__":
    key = jax.random.PRNGKey(0)
    k_x, k_w, k_b, k_x2, k_x3 = jax.random.split(key, 5)

    # Deterministic nn.Linear(52, 21)-style init (uniform +/- 1/sqrt(fan_in)).
    bound = 1.0 / (NUM_NODES_PER_GRAPH ** 0.5)
    w = jax.random.uniform(k_w, (NUM_NODES_PER_GRAPH, NUM_CLASSES),
                           minval=-bound, maxval=bound, dtype=jnp.float32)
    b = jax.random.uniform(k_b, (NUM_CLASSES,),
                           minval=-bound, maxval=bound, dtype=jnp.float32)

    # F = 500 branch: 24 graphs, tile_b=8 -> grid (3, 1) (exercises batch-tile pipelining).
    x500 = jax.random.normal(k_x, (24 * NUM_NODES_PER_GRAPH, 500), dtype=jnp.float32)
    _check(x500, w, b, tile_b=8)
    # Same data with the default single-tile config.
    _check(x500, w, b)

    # F = 960 branch: 8 graphs -> grid (1, 4) (exercises the feature-chunk reduction axis).
    x960 = jax.random.normal(k_x2, (8 * NUM_NODES_PER_GRAPH, 960), dtype=jnp.float32)
    _check(x960, w, b)

    # F = 960 branch, batch not a multiple of 8 (partial-block / odd-tile path).
    x960b = jax.random.normal(k_x3, (10 * NUM_NODES_PER_GRAPH, 960), dtype=jnp.float32)
    _check(x960b, w, b)

    print("KERNEL_OK")
</pallas_src>

<mosaic_0001>
module attributes {stable_mosaic.version = 11 : i64} {
  func.func @_head_kernel(%arg0: i32, %arg1: i32, %arg2: memref<8x52x500xf32, #tpu.memory_space<vmem>>, %arg3: memref<1x1x500xf32, #tpu.memory_space<vmem>>, %arg4: memref<52x128xf32, #tpu.memory_space<vmem>>, %arg5: memref<1x128xf32, #tpu.memory_space<vmem>>, %arg6: memref<8x128xf32, #tpu.memory_space<vmem>>, %arg7: memref<8x52xf32, #tpu.memory_space<vmem>>) attributes {dimension_semantics = [#tpu.dimension_semantics<parallel>, #tpu.dimension_semantics<arbitrary>], iteration_bounds = array<i64: 3, 1>, scalar_prefetch = 0 : i64, scratch_operands = 1 : i64, tpu.core_type = #tpu.core_type<tc>, window_params = [{transform_indices = @transform_0, window_bounds = array<i64: 8, 52, 500>}, {transform_indices = @transform_1, window_bounds = array<i64: 1, 1, 500>}, {pipeline_mode = #tpu.pipeline_mode<synchronous>, transform_indices = @transform_2, window_bounds = array<i64: 52, 128>}, {pipeline_mode = #tpu.pipeline_mode<synchronous>, transform_indices = @transform_3, window_bounds = array<i64: 1, 128>}, {transform_indices = @transform_4, window_bounds = array<i64: 8, 128>}]} {
    %c0_i32 = arith.constant 0 : i32
    %0 = arith.cmpi eq, %arg1, %c0_i32 : i32
    %1 = arith.extui %0 : i1 to i32
    %c0_i32_0 = arith.constant 0 : i32
    %2 = arith.cmpi ne, %1, %c0_i32_0 : i32
    scf.if %2 {
      %cst_12 = arith.constant 0.000000e+00 : f32
      %14 = vector.broadcast %cst_12 : f32 to vector<8x52xf32>
      %c0_13 = arith.constant 0 : index
      %c0_14 = arith.constant 0 : index
      %15 = vector.load %arg7[%c0_13, %c0_14] : memref<8x52xf32, #tpu.memory_space<vmem>>, vector<8x52xf32>
      tpu.vector_store %arg7[%c0_13, %c0_14], %14 {strides = array<i32>} : memref<8x52xf32, #tpu.memory_space<vmem>>, vector<8x52xf32>,
    } else {
    }
    %c0 = arith.constant 0 : index
    %c0_1 = arith.constant 0 : index
    %3 = vector.load %arg7[%c0, %c0_1] : memref<8x52xf32, #tpu.memory_space<vmem>>, vector<8x52xf32>
    %c0_2 = arith.constant 0 : index
    %c0_3 = arith.constant 0 : index
    %c0_4 = arith.constant 0 : index
    %4 = vector.load %arg2[%c0_2, %c0_3, %c0_4] : memref<8x52x500xf32, #tpu.memory_space<vmem>>, vector<8x52x500xf32>
    %c0_5 = arith.constant 0 : index
    %c0_6 = arith.constant 0 : index
    %c0_7 = arith.constant 0 : index
    %5 = vector.load %arg3[%c0_5, %c0_6, %c0_7] : memref<1x1x500xf32, #tpu.memory_space<vmem>>, vector<1x1x500xf32>
    %6 = vector.broadcast %5 : vector<1x1x500xf32> to vector<8x52x500xf32>
    %7 = arith.mulf %4, %6 : vector<8x52x500xf32>
    %cst = arith.constant dense<0.000000e+00> : vector<8x52xf32>
    %8 = vector.multi_reduction <add>, %7, %cst [2] : vector<8x52x500xf32> to vector<8x52xf32>
    %9 = arith.addf %3, %8 : vector<8x52xf32>
    %c0_8 = arith.constant 0 : index
    %c0_9 = arith.constant 0 : index
    %10 = vector.load %arg7[%c0_8, %c0_9] : memref<8x52xf32, #tpu.memory_space<vmem>>, vector<8x52xf32>
    tpu.vector_store %arg7[%c0_8, %c0_9], %9 {strides = array<i32>} : memref<8x52xf32, #tpu.memory_space<vmem>>, vector<8x52xf32>,
    %c0_i32_10 = arith.constant 0 : i32
    %11 = arith.cmpi eq, %arg1, %c0_i32_10 : i32
    %12 = arith.extui %11 : i1 to i32
    %c0_i32_11 = arith.constant 0 : i32
    %13 = arith.cmpi ne, %12, %c0_i32_11 : i32
    scf.if %13 {
      %c0_12 = arith.constant 0 : index
      %c0_13 = arith.constant 0 : index
      %14 = vector.load %arg7[%c0_12, %c0_13] : memref<8x52xf32, #tpu.memory_space<vmem>>, vector<8x52xf32>
      %c0_14 = arith.constant 0 : index
      %c0_15 = arith.constant 0 : index
      %15 = vector.load %arg4[%c0_14, %c0_15] : memref<52x128xf32, #tpu.memory_space<vmem>>, vector<52x128xf32>
      %cst_16 = arith.constant dense<0.000000e+00> : vector<8x128xf32>
      %16 = tpu.matmul %14, %15, %cst_16 {dimension_numbers = #tpu.dot_dimension_numbers<[1], [0], [0], [1], [0, 0, 1, 1], [], []>} : vector<8x52xf32>, vector<52x128xf32>, vector<8x128xf32> -> vector<8x128xf32>
      %c0_17 = arith.constant 0 : index
      %c0_18 = arith.constant 0 : index
      %17 = vector.load %arg5[%c0_17, %c0_18] : memref<1x128xf32, #tpu.memory_space<vmem>>, vector<1x128xf32>
      %18 = vector.broadcast %17 : vector<1x128xf32> to vector<8x128xf32>
      %19 = arith.addf %16, %18 : vector<8x128xf32>
      %c0_19 = arith.constant 0 : index
      %c0_20 = arith.constant 0 : index
      %20 = vector.load %arg6[%c0_19, %c0_20] : memref<8x128xf32, #tpu.memory_space<vmem>>, vector<8x128xf32>
      tpu.vector_store %arg6[%c0_19, %c0_20], %19 {strides = array<i32>} : memref<8x128xf32, #tpu.memory_space<vmem>>, vector<8x128xf32>,
    } else {
    }
    return
  }
  func.func @transform_0(%arg0: i32, %arg1: i32) -> (i32, i32, i32) {
    %c0_i32 = arith.constant 0 : i32
    %0 = arith.addi %arg1, %c0_i32 : i32
    %c0_i32_0 = arith.constant 0 : i32
    %c0_i32_1 = arith.constant 0 : i32
    return %arg0, %c0_i32_0, %0 : i32, i32, i32
  }
  func.func @transform_1(%arg0: i32, %arg1: i32) -> (i32, i32, i32) {
    %c0_i32 = arith.constant 0 : i32
    %c0_i32_0 = arith.constant 0 : i32
    %c0_i32_1 = arith.constant 0 : i32
    return %c0_i32, %c0_i32_0, %arg1 : i32, i32, i32
  }
  func.func @transform_2(%arg0: i32, %arg1: i32) -> (i32, i32) {
    %c0_i32 = arith.constant 0 : i32
    %c0_i32_0 = arith.constant 0 : i32
    %c0_i32_1 = arith.constant 0 : i32
    return %c0_i32, %c0_i32_0 : i32, i32
  }
  func.func @transform_3(%arg0: i32, %arg1: i32) -> (i32, i32) {
    %c0_i32 = arith.constant 0 : i32
    %c0_i32_0 = arith.constant 0 : i32
    %c0_i32_1 = arith.constant 0 : i32
    return %c0_i32, %c0_i32_0 : i32, i32
  }
  func.func @transform_4(%arg0: i32, %arg1: i32) -> (i32, i32) {
    %c0_i32 = arith.constant 0 : i32
    %c0_i32_0 = arith.constant 0 : i32
    return %arg0, %c0_i32 : i32, i32
  }
}

</mosaic_0001>

<bundles_post_ra>
// kernel: tpu_custom_call.1
= control target key start
LH: loop header
LB: loop body
LE: loop exit
PB: predicated region body
PF: predicated region fallthrough
CT: control target
= control target key end

     0   :  { %9 = vsyncpa [#allocation4], 0  ;;  %s2691_s0 = inlined_call_operand.vmem [shape: f32[24,52,500], index: 0, kind: input, shape index: {}]   ;;  %s2692_s1 = inlined_call_operand.vmem [shape: f32[1,1,500], index: 1, kind: input, shape index: {}]   ;;  %s2693_s2 = inlined_call_operand.vmem [shape: f32[52,128], index: 2, kind: input, shape index: {}]   ;;  %s2694_s3 = inlined_call_operand.vmem [shape: f32[1,128], index: 3, kind: input, shape index: {}]   ;;  %s2695_s4 = inlined_call_operand.hbm [shape: f32[24,128], index: 4, kind: output, shape index: {}]  }
   0x1   :  { %11 = vsyncpa [#allocation4 + $0x1], 0  ;;  %s1860_s15 = smov 0   ;;  %s1862_s16 = smov 0  }
   0x2   :  { %s1864_s17 = smov 0   ;;  %s1866_s18 = smov 0  }
   0x3   :  { %s1868_s19 = smov 0   ;;  %s1870_s20 = smov 0  }
   0x4 LB: > { %s1642_s21 = sadd.s32 4294967295, %s1829_s20   ;;  %s1643_s22 = sadd.s32 4294967294, %s1829_s20   ;;  %s1829_s20 = sphi %s1870_s20, %s17_s20   ;;  %s1825_s19 = sphi %s1868_s19, %s2702_s19   ;;  %s1821_s18 = sphi %s1866_s18, %s2701_s18   ;;  %s1817_s17 = sphi %s1864_s17, %s2700_s17   ;;  %s1813_s16 = sphi %s1862_s16, %s2699_s16   ;;  %s1809_s15 = sphi %s1860_s15, %s2698_s15  }
   0x5   : > { %s29_s23 = sadd.s32 1, %s1825_s19  ;;  %s132_s24 = sadd.s32 1, %s1817_s17 }
   0x6   : > { %p31_p0 = scmp.ge.s32.totalorder %s29_s23, 3  ;;  %p142_p1 = scmp.ne.s32.totalorder %s1817_s17, %s1813_s16 }
   0x7   : > { %p143_p2 = scmp.eq.s32.totalorder %s1642_s21, 2  ;;  %p148_p3 = scmp.ne.s32.totalorder %s1813_s16, %s1809_s15 }
   0x8   : > { %s2704_s23 = smov (%p31_p0, %s29_s23), 0  ;;  %p149_p5 = scmp.eq.s32.totalorder %s1643_s22, 2 }
   0x9   : > { %p1900_p4 = por %p143_p2, %p142_p1  ;;  %s129_s26 = ssub.s32 %s1825_s19, %s2704_s23 }
   0xa   : > { %p1647_p6 = scmp.ge.s32.totalorder %s1829_s20, 1  ;;  %p130_p7 = scmp.eq.s32.totalorder %s129_s26, 0 }
   0xb   : > { %p1907_p8 = por %p149_p5, %p148_p3  ;;  %p196_p9 = scmp.lt.s32.totalorder %s1829_s20, 4 }
   0xc   : > { %s1913_s28 = scalar_select %p130_p7, %s1817_s17, %s132_s24  }
   0xd   : > { %p197_p10 = pnand %p1647_p6, %p196_p9 }
   0xe   : > { %s1649_s29 = sshll.u32 (!%p197_p10), %s1821_s18, 3  ;;  %v481_v0 = vlaneseq (!%p197_p10)  ;;  %v479_v2 = vld [vmem:[%s2692_s1] sm:$0xf] (!%p197_p10)  ;;  %vm727_vm0 = vcmask (!%p197_p10), 949248   ;;  %vm762_vm1 = vcmask (!%p197_p10), 1043456   ;;  %vm768_vm2 = vcmask (!%p197_p10), 945152  }
   0xf   : > { %200 = sbr.rel (%p197_p10) target bundleno = 534 (0x216), region = 36  ;;  %p233_p11 = scmp.lt.s32.totalorder (!%p197_p10), %s1649_s29, 23  ;;  %vm252_vm3 = vcmask (!%p197_p10), 424960   ;;  %vm1833_vm4 = vmmov (!%p197_p10), 0   ;;  %vm1155_vm5 = vcmask (!%p197_p10), 130112   ;;  %vm1162_vm6 = vcmask (!%p197_p10), 195712  }
  0x10   : > { %v1917_v1 = vshrl.u32 (!%p197_p10), %v481_v0, 7  ;;  %vm1169_vm7 = vcmask (!%p197_p10), 261312   ;;  %vm1176_vm8 = vcmask (!%p197_p10), 326912   ;;  %vm1183_vm9 = vcmask (!%p197_p10), 392512   ;;  %s228_s8 = sand.u32 (!%p197_p10), 1, %s1813_s16   ;;  %s1655_s12 = sshll.u32 (!%p197_p10), %s1821_s18, 7 }
  0x11   : > { %vm1190_vm10 = vcmask (!%p197_p10), 458112   ;;  %vm1430_vm11 = vcmask (!%p197_p10), 1041409   ;;  %vm1432_vm12 = vcmask (!%p197_p10), 1042434   ;;  %vm1434_vm13 = vcmask (!%p197_p10), 1043459   ;;  %s2644_s24 = scalar_lea.hbm (!%p197_p10), %s2695_s4, %s1655_s12  ;;  %s1544_s26 = scalar_lea.sflag (!%p197_p10), [#allocation4], %s228_s8 }
  0x12   : > { %v483_v3 = vsub.s32 (!%p197_p10), 0, %v1917_v1  ;;  %v487_v4 = vsub.s32 (!%p197_p10), 1, %v1917_v1  ;;  %v491_v5 = vsub.s32 (!%p197_p10), 2, %v1917_v1  ;;  %v495_v6 = vsub.s32 (!%p197_p10), 3, %v1917_v1  ;;  %s1834_s18 = smov (!%p197_p10), [#allocation3]  }
  0x13   : > { %vm1436_vm14 = vcmask (!%p197_p10), 1044484   ;;  %vm1438_vm15 = vcmask (!%p197_p10), 1045509   ;;  %s1755_s30 = sshll.u32 (!%p197_p10), %s1834_s18, 4  ;;  %s1756_s30 = int_to_ptr.vmem [resolvable:$false] %s1755_s30 }
  0x14   : > { %v1926_v7 = vrot.slane (!%p197_p10), %v479_v2, %v483_v3  ;;  %v1928_v8 = vrot.slane (!%p197_p10), %v479_v2, %v487_v4  ;;  %v1930_v9 = vrot.slane (!%p197_p10), %v479_v2, %v491_v5  ;;  %v1932_v10 = vrot.slane (!%p197_p10), %v479_v2, %v495_v6  ;;  %s1757_s5 = scalar_lea.vmem (!%p197_p10), %s1756_s30, 256 }
  0x16   : > { %s2706_s29 = smov (!%p233_p11, %s1649_s29), 23 }
  0x17   : > { %s1692_s6 = smul.u32 224, %s2706_s29 }
  0x19   : > { %s1937_s9 = scalar_lea.vmem %s2691_s0, %s1692_s6 }
  0x1a   : > { %v283_v11 = vld [vmem:[%s1937_s9 + $0xe0] sm:$0xff]  ;;  %v284_v12 = vld [vmem:[%s1937_s9 + $0xe8] sm:$0xff]  ;;  %v285_v13 = vld [vmem:[%s1937_s9 + $0xf0] sm:$0xff] }
  0x1b   : > { %v286_v14 = vld [vmem:[%s1937_s9 + $0xf8] sm:$0xff]  ;;  %v529_v15 = vmul.f32 %v1926_v7, %v283_v11  ;;  %v530_v16 = vmul.f32 %v1928_v8, %v284_v12  ;;  %v531_v17 = vmul.f32 %v1930_v9, %v285_v13  ;;  %v255_v18 = vld [vmem:[%s1937_s9] sm:$0xff]  ;;  %v256_v19 = vld [vmem:[%s1937_s9 + $0x8] sm:$0xff] }
  0x1c   : > { %v532_v20 = vmul.f32 %v1932_v10, %v286_v14  ;;  %v257_v21 = vld [vmem:[%s1937_s9 + $0x10] sm:$0xff]  ;;  %v258_v22 = vld [vmem:[%s1937_s9 + $0x18] sm:$0xff]  ;;  %v501_v23 = vmul.f32 %v1926_v7, %v255_v18  ;;  %v502_v24 = vmul.f32 %v1928_v8, %v256_v19  ;;  %v287_v25 = vld [vmem:[%s1937_s9 + $0x100] sm:$0xff] }
  0x1d   : > { %v773_v26 = vadd.f32 %v530_v16, %v529_v15  ;;  %v503_v27 = vmul.f32 %v1930_v9, %v257_v21  ;;  %v504_v28 = vmul.f32 %v1932_v10, %v258_v22  ;;  %v288_v29 = vld [vmem:[%s1937_s9 + $0x108] sm:$0xff]  ;;  %v289_v30 = vld [vmem:[%s1937_s9 + $0x110] sm:$0xff]  ;;  %v290_v31 = vld [vmem:[%s1937_s9 + $0x118] sm:$0xff]  ;;  %v533_v32 = vmul.f32 %v1926_v7, %v287_v25 }
  0x1e   : > { %v775_v33 = vsel %vm727_vm0, %v532_v20, 0.0  ;;  %v725_v34 = vadd.f32 %v502_v24, %v501_v23  ;;  %v534_v35 = vmul.f32 %v1928_v8, %v288_v29  ;;  %v535_v36 = vmul.f32 %v1930_v9, %v289_v30  ;;  %v259_v37 = vld [vmem:[%s1937_s9 + $0x20] sm:$0xff]  ;;  %v260_v38 = vld [vmem:[%s1937_s9 + $0x28] sm:$0xff]  ;;  %v261_v39 = vld [vmem:[%s1937_s9 + $0x30] sm:$0xff] }
  0x1f   : > { %v774_v40 = vadd.f32 %v773_v26, %v531_v17  ;;  %v728_v41 = vsel %vm727_vm0, %v504_v28, 0.0  ;;  %v536_v42 = vmul.f32 %v1932_v10, %v290_v31  ;;  %v262_v43 = vld [vmem:[%s1937_s9 + $0x38] sm:$0xff]  ;;  %v505_v44 = vmul.f32 %v1926_v7, %v259_v37  ;;  %v291_v45 = vld [vmem:[%s1937_s9 + $0x120] sm:$0xff]  ;;  %v292_v46 = vld [vmem:[%s1937_s9 + $0x128] sm:$0xff] }
  0x20   : > { %v726_v47 = vadd.f32 %v725_v34, %v503_v27  ;;  %v779_v48 = vadd.f32 %v534_v35, %v533_v32  ;;  %v506_v49 = vmul.f32 %v1928_v8, %v260_v38  ;;  %v507_v50 = vmul.f32 %v1930_v9, %v261_v39  ;;  %v293_v51 = vld [vmem:[%s1937_s9 + $0x130] sm:$0xff]  ;;  %v294_v52 = vld [vmem:[%s1937_s9 + $0x138] sm:$0xff]  ;;  %v263_v53 = vld [vmem:[%s1937_s9 + $0x40] sm:$0xff] }
  0x21   : > { %v776_v54 = vadd.f32 %v775_v33, %v774_v40  ;;  %v781_v55 = vsel %vm727_vm0, %v536_v42, 0.0  ;;  %v508_v56 = vmul.f32 %v1932_v10, %v262_v43  ;;  %v537_v57 = vmul.f32 %v1926_v7, %v291_v45  ;;  %v264_v58 = vld [vmem:[%s1937_s9 + $0x48] sm:$0xff]  ;;  %v265_v63 = vld [vmem:[%s1937_s9 + $0x50] sm:$0xff]  ;;  %v266_v2 = vld [vmem:[%s1937_s9 + $0x58] sm:$0xff] }
  0x22   : > { %v729_v59 = vadd.f32 %v728_v41, %v726_v47  ;;  %v780_v60 = vadd.f32 %v779_v48, %v535_v36  ;;  %v732_v61 = vadd.f32 %v506_v49, %v505_v44  ;;  %v538_v62 = vmul.f32 %v1928_v8, %v292_v46  ;;  %v315_v3 = vld [vmem:[%s1937_s9 + $0x1e0] sm:$0xff]  ;;  %v316_v12 = vld [vmem:[%s1937_s9 + $0x1e8] sm:$0xff]  ;;  %v317_v17 = vld [vmem:[%s1937_s9 + $0x1f0] sm:$0xff] }
  0x23   : > { %777 = vadd.xlane.f32.xlu1 %v776_v54  ;;  %v734_v4 = vsel %vm727_vm0, %v508_v56, 0.0  ;;  %v539_v5 = vmul.f32 %v1930_v9, %v293_v51  ;;  %v540_v6 = vmul.f32 %v1932_v10, %v294_v52  ;;  %v509_v11 = vmul.f32 %v1926_v7, %v263_v53  ;;  %v318_v18 = vld [vmem:[%s1937_s9 + $0x1f8] sm:$0xff]  ;;  %v311_v19 = vld [vmem:[%s1937_s9 + $0x1c0] sm:$0xff]  ;;  %v312_v24 = vld [vmem:[%s1937_s9 + $0x1c8] sm:$0xff] }
  0x24   : > { %730 = vadd.xlane.f32.xlu0 %v729_v59  ;;  %v782_v13 = vadd.f32 %v781_v55, %v780_v60  ;;  %v733_v14 = vadd.f32 %v732_v61, %v507_v50  ;;  %v785_v15 = vadd.f32 %v538_v62, %v537_v57  ;;  %v510_v16 = vmul.f32 %v1928_v8, %v264_v58  ;;  %v313_v29 = vld [vmem:[%s1937_s9 + $0x1d0] sm:$0xff]  ;;  %v314_v30 = vld [vmem:[%s1937_s9 + $0x1d8] sm:$0xff]  ;;  %v295_v31 = vld [vmem:[%s1937_s9 + $0x140] sm:$0xff] }
  0x25   : > { %v787_v20 = vsel %vm727_vm0, %v540_v6, 0.0  ;;  %v511_v21 = vmul.f32 %v1930_v9, %v265_v63  ;;  %v512_v22 = vmul.f32 %v1932_v10, %v266_v2  ;;  %v561_v23 = vmul.f32 %v1926_v7, %v315_v3  ;;  %v296_v36 = vld [vmem:[%s1937_s9 + $0x148] sm:$0xff]  ;;  %v297_v41 = vld [vmem:[%s1937_s9 + $0x150] sm:$0xff]  ;;  %v298_v42 = vld [vmem:[%s1937_s9 + $0x158] sm:$0xff] }
  0x26   : > { %v735_v25 = vadd.f32 %v734_v4, %v733_v14  ;;  %v786_v26 = vadd.f32 %v785_v15, %v539_v5  ;;  %v738_v27 = vadd.f32 %v510_v16, %v509_v11  ;;  %v562_v28 = vmul.f32 %v1928_v8, %v316_v12  ;;  %v267_v43 = vld [vmem:[%s1937_s9 + $0x60] sm:$0xff]  ;;  %v268_v48 = vld [vmem:[%s1937_s9 + $0x68] sm:$0xff]  ;;  %v269_v53 = vld [vmem:[%s1937_s9 + $0x70] sm:$0xff] }
  0x27   : > { %783 = vadd.xlane.f32.xlu1 %v782_v13  ;;  %v740_v32 = vsel %vm727_vm0, %v512_v22, 0.0  ;;  %v563_v33 = vmul.f32 %v1930_v9, %v317_v17  ;;  %v564_v34 = vmul.f32 %v1932_v10, %v318_v18  ;;  %v557_v35 = vmul.f32 %v1926_v7, %v311_v19  ;;  %v270_v54 = vld [vmem:[%s1937_s9 + $0x78] sm:$0xff]  ;;  %v339_v55 = vld [vmem:[%s1937_s9 + $0x2a0] sm:$0xff]  ;;  %v340_v60 = vld [vmem:[%s1937_s9 + $0x2a8] sm:$0xff] }
  0x28   : > { %736 = vadd.xlane.f32.xlu0 %v735_v25  ;;  %v788_v37 = vadd.f32 %v787_v20, %v786_v26  ;;  %v739_v38 = vadd.f32 %v738_v27, %v511_v21  ;;  %v824_v39 = vadd.f32 %v562_v28, %v561_v23  ;;  %v558_v40 = vmul.f32 %v1928_v8, %v312_v24  ;;  %v341_v3 = vld [vmem:[%s1937_s9 + $0x2b0] sm:$0xff]  ;;  %v342_v4 = vld [vmem:[%s1937_s9 + $0x2b8] sm:$0xff]  ;;  %v319_v5 = vld [vmem:[%s1937_s9 + $0x200] sm:$0xff] }
  0x29   : > { %v826_v44 = vsel %vm727_vm0, %v564_v34, 0.0  ;;  %v559_v45 = vmul.f32 %v1930_v9, %v313_v29  ;;  %v560_v46 = vmul.f32 %v1932_v10, %v314_v30  ;;  %v541_v47 = vmul.f32 %v1926_v7, %v295_v31  ;;  %v320_v14 = vld [vmem:[%s1937_s9 + $0x208] sm:$0xff]  ;;  %v321_v19 = vld [vmem:[%s1937_s9 + $0x210] sm:$0xff]  ;;  %v322_v20 = vld [vmem:[%s1937_s9 + $0x218] sm:$0xff] }
  0x2a   : > { %v741_v49 = vadd.f32 %v740_v32, %v739_v38  ;;  %v825_v50 = vadd.f32 %v824_v39, %v563_v33  ;;  %v818_v51 = vadd.f32 %v558_v40, %v557_v35  ;;  %v542_v52 = vmul.f32 %v1928_v8, %v296_v36  ;;  %v271_v21 = vld [vmem:[%s1937_s9 + $0x80] sm:$0xff]  ;;  %v272_v26 = vld [vmem:[%s1937_s9 + $0x88] sm:$0xff]  ;;  %v273_v31 = vld [vmem:[%s1937_s9 + $0x90] sm:$0xff] }
  0x2b   : > { %789 = vadd.xlane.f32.xlu1 %v788_v37  ;;  %v820_v56 = vsel %vm727_vm0, %v560_v46, 0.0  ;;  %v543_v57 = vmul.f32 %v1930_v9, %v297_v41  ;;  %v544_v58 = vmul.f32 %v1932_v10, %v298_v42  ;;  %v513_v59 = vmul.f32 %v1926_v7, %v267_v43  ;;  %v274_v32 = vld [vmem:[%s1937_s9 + $0x98] sm:$0xff]  ;;  %v343_v33 = vld [vmem:[%s1937_s9 + $0x2c0] sm:$0xff]  ;;  %v344_v38 = vld [vmem:[%s1937_s9 + $0x2c8] sm:$0xff] }
  0x2c   : > { %742 = vadd.xlane.f32.xlu0 %v741_v49  ;;  %v827_v61 = vadd.f32 %v826_v44, %v825_v50  ;;  %v819_v62 = vadd.f32 %v818_v51, %v559_v45  ;;  %v791_v63 = vadd.f32 %v542_v52, %v541_v47  ;;  %v514_v2 = vmul.f32 %v1928_v8, %v268_v48  ;;  %v345_v43 = vld [vmem:[%s1937_s9 + $0x2d0] sm:$0xff]  ;;  %v346_v44 = vld [vmem:[%s1937_s9 + $0x2d8] sm:$0xff]  ;;  %v323_v45 = vld [vmem:[%s1937_s9 + $0x220] sm:$0xff] }
  0x2d   : > { %v793_v6 = vsel %vm727_vm0, %v544_v58, 0.0  ;;  %v515_v11 = vmul.f32 %v1930_v9, %v269_v53  ;;  %v516_v12 = vmul.f32 %v1932_v10, %v270_v54  ;;  %v585_v13 = vmul.f32 %v1926_v7, %v339_v55  ;;  %v324_v50 = vld [vmem:[%s1937_s9 + $0x228] sm:$0xff]  ;;  %v325_v55 = vld [vmem:[%s1937_s9 + $0x230] sm:$0xff] }
  0x2e   : > { %v821_v15 = vadd.f32 %v820_v56, %v819_v62  ;;  %v792_v16 = vadd.f32 %v791_v63, %v543_v57  ;;  %v744_v17 = vadd.f32 %v514_v2, %v513_v59  ;;  %v586_v18 = vmul.f32 %v1928_v8, %v340_v60  ;;  %v326_v56 = vld [vmem:[%s1937_s9 + $0x238] sm:$0xff]  ;;  %v299_v57 = vld [vmem:[%s1937_s9 + $0x160] sm:$0xff]  ;;  %v300_v62 = vld [vmem:[%s1937_s9 + $0x168] sm:$0xff] }
  0x2f   : > { %828 = vadd.xlane.f32.xlu1 %v827_v61  ;;  %v746_v22 = vsel %vm727_vm0, %v516_v12, 0.0  ;;  %v587_v23 = vmul.f32 %v1930_v9, %v341_v3  ;;  %v588_v24 = vmul.f32 %v1932_v10, %v342_v4  ;;  %v565_v25 = vmul.f32 %v1926_v7, %v319_v5  ;;  %v301_v5 = vld [vmem:[%s1937_s9 + $0x170] sm:$0xff] }
  0x30   : > { %822 = vadd.xlane.f32.xlu0 %v821_v15  ;;  %v794_v27 = vadd.f32 %v793_v6, %v792_v16  ;;  %v745_v28 = vadd.f32 %v744_v17, %v515_v11  ;;  %v863_v29 = vadd.f32 %v586_v18, %v585_v13  ;;  %v566_v30 = vmul.f32 %v1928_v8, %v320_v14  ;;  %v302_v6 = vld [vmem:[%s1937_s9 + $0x178] sm:$0xff]  ;;  %v367_v11 = vld [vmem:[%s1937_s9 + $0x380] sm:$0xff]  ;;  %v368_v16 = vld [vmem:[%s1937_s9 + $0x388] sm:$0xff] }
  0x31   : > { %v865_v34 = vsel %vm727_vm0, %v588_v24, 0.0  ;;  %v567_v35 = vmul.f32 %v1930_v9, %v321_v19  ;;  %v568_v36 = vmul.f32 %v1932_v10, %v322_v20  ;;  %v517_v37 = vmul.f32 %v1926_v7, %v271_v21  ;;  %v369_v21 = vld [vmem:[%s1937_s9 + $0x390] sm:$0xff] }
  0x32   : > { %v747_v39 = vadd.f32 %v746_v22, %v745_v28  ;;  %v864_v40 = vadd.f32 %v863_v29, %v587_v23  ;;  %v830_v41 = vadd.f32 %v566_v30, %v565_v25  ;;  %v518_v42 = vmul.f32 %v1928_v8, %v272_v26  ;;  %v370_v22 = vld [vmem:[%s1937_s9 + $0x398] sm:$0xff]  ;;  %v347_v23 = vld [vmem:[%s1937_s9 + $0x2e0] sm:$0xff]  ;;  %v348_v28 = vld [vmem:[%s1937_s9 + $0x2e8] sm:$0xff] }
  0x33   : > { %795 = vadd.xlane.f32.xlu1 %v794_v27  ;;  %v832_v46 = vsel %vm727_vm0, %v568_v36, 0.0  ;;  %v519_v47 = vmul.f32 %v1930_v9, %v273_v31  ;;  %v520_v48 = vmul.f32 %v1932_v10, %v274_v32  ;;  %v589_v49 = vmul.f32 %v1926_v7, %v343_v33  ;;  %v349_v33 = vld [vmem:[%s1937_s9 + $0x2f0] sm:$0xff] }
  0x34   : > { %748 = vadd.xlane.f32.xlu0 %v747_v39  ;;  %v866_v51 = vadd.f32 %v865_v34, %v864_v40  ;;  %v831_v52 = vadd.f32 %v830_v41, %v567_v35  ;;  %v750_v53 = vadd.f32 %v518_v42, %v517_v37  ;;  %v590_v54 = vmul.f32 %v1928_v8, %v344_v38  ;;  %v350_v34 = vld [vmem:[%s1937_s9 + $0x2f8] sm:$0xff]  ;;  %v275_v35 = vld [vmem:[%s1937_s9 + $0xa0] sm:$0xff]  ;;  %v276_v40 = vld [vmem:[%s1937_s9 + $0xa8] sm:$0xff] }
  0x35   : > { %v752_v58 = vsel %vm727_vm0, %v520_v48, 0.0  ;;  %v591_v59 = vmul.f32 %v1930_v9, %v345_v43  ;;  %v592_v60 = vmul.f32 %v1932_v10, %v346_v44  ;;  %v569_v61 = vmul.f32 %v1926_v7, %v323_v45  ;;  %v277_v45 = vld [vmem:[%s1937_s9 + $0xb0] sm:$0xff] }
  0x36   : > { %v833_v63 = vadd.f32 %v832_v46, %v831_v52  ;;  %v751_v2 = vadd.f32 %v750_v53, %v519_v47  ;;  %v869_v3 = vadd.f32 %v590_v54, %v589_v49  ;;  %v570_v4 = vmul.f32 %v1928_v8, %v324_v50  ;;  %v278_v46 = vld [vmem:[%s1937_s9 + $0xb8] sm:$0xff]  ;;  %v371_v47 = vld [vmem:[%s1937_s9 + $0x3a0] sm:$0xff]  ;;  %v372_v52 = vld [vmem:[%s1937_s9 + $0x3a8] sm:$0xff] }
  0x37   : > { %867 = vadd.xlane.f32.xlu1 %v866_v51  ;;  %v871_v12 = vsel %vm727_vm0, %v592_v60, 0.0  ;;  %v571_v13 = vmul.f32 %v1930_v9, %v325_v55  ;;  %v572_v14 = vmul.f32 %v1932_v10, %v326_v56  ;;  %v545_v15 = vmul.f32 %v1926_v7, %v299_v57  ;;  %v373_v57 = vld [vmem:[%s1937_s9 + $0x3b0] sm:$0xff] }
  0x38   : > { %834 = vadd.xlane.f32.xlu0 %v833_v63  ;;  %v753_v17 = vadd.f32 %v752_v58, %v751_v2  ;;  %v870_v18 = vadd.f32 %v869_v3, %v591_v59  ;;  %v836_v19 = vadd.f32 %v570_v4, %v569_v61  ;;  %v546_v20 = vmul.f32 %v1928_v8, %v300_v62  ;;  %v374_v58 = vld [vmem:[%s1937_s9 + $0x3b8] sm:$0xff]  ;;  %v327_v59 = vld [vmem:[%s1937_s9 + $0x240] sm:$0xff]  ;;  %v328_v2 = vld [vmem:[%s1937_s9 + $0x248] sm:$0xff] }
  0x39   : > { %v838_v24 = vsel %vm727_vm0, %v572_v14, 0.0  ;;  %v547_v25 = vmul.f32 %v1930_v9, %v301_v5  ;;  %v548_v26 = vmul.f32 %v1932_v10, %v302_v6  ;;  %v613_v27 = vmul.f32 %v1926_v7, %v367_v11  ;;  %v329_v11 = vld [vmem:[%s1937_s9 + $0x250] sm:$0xff] }
  0x3a   : > { %v872_v29 = vadd.f32 %v871_v12, %v870_v18  ;;  %v837_v30 = vadd.f32 %v836_v19, %v571_v13  ;;  %v797_v31 = vadd.f32 %v546_v20, %v545_v15  ;;  %v614_v32 = vmul.f32 %v1928_v8, %v368_v16  ;;  %v330_v12 = vld [vmem:[%s1937_s9 + $0x258] sm:$0xff]  ;;  %v303_v13 = vld [vmem:[%s1937_s9 + $0x180] sm:$0xff]  ;;  %v304_v18 = vld [vmem:[%s1937_s9 + $0x188] sm:$0xff] }
  0x3b   : > { %754 = vadd.xlane.f32.xlu1 %v753_v17  ;;  %v799_v36 = vsel %vm727_vm0, %v548_v26, 0.0  ;;  %v615_v37 = vmul.f32 %v1930_v9, %v369_v21  ;;  %v616_v38 = vmul.f32 %v1932_v10, %v370_v22  ;;  %v593_v39 = vmul.f32 %v1926_v7, %v347_v23  ;;  %v305_v23 = vld [vmem:[%s1937_s9 + $0x190] sm:$0xff] }
  0x3c   : > { %873 = vadd.xlane.f32.xlu0 %v872_v29  ;;  %v839_v41 = vadd.f32 %v838_v24, %v837_v30  ;;  %v798_v42 = vadd.f32 %v797_v31, %v547_v25  ;;  %v908_v43 = vadd.f32 %v614_v32, %v613_v27  ;;  %v594_v44 = vmul.f32 %v1928_v8, %v348_v28  ;;  %v306_v24 = vld [vmem:[%s1937_s9 + $0x198] sm:$0xff]  ;;  %v375_v25 = vld [vmem:[%s1937_s9 + $0x3c0] sm:$0xff]  ;;  %v376_v30 = vld [vmem:[%s1937_s9 + $0x3c8] sm:$0xff] }
  0x3d   : > { %v910_v48 = vsel %vm727_vm0, %v616_v38, 0.0  ;;  %v595_v49 = vmul.f32 %v1930_v9, %v349_v33  ;;  %v596_v50 = vmul.f32 %v1932_v10, %v350_v34  ;;  %v521_v51 = vmul.f32 %v1926_v7, %v275_v35  ;;  %v377_v35 = vld [vmem:[%s1937_s9 + $0x3d0] sm:$0xff] }
  0x3e   : > { %v800_v53 = vadd.f32 %v799_v36, %v798_v42  ;;  %v909_v54 = vadd.f32 %v908_v43, %v615_v37  ;;  %v875_v55 = vadd.f32 %v594_v44, %v593_v39  ;;  %v522_v56 = vmul.f32 %v1928_v8, %v276_v40  ;;  %v378_v36 = vld [vmem:[%s1937_s9 + $0x3d8] sm:$0xff]  ;;  %v351_v37 = vld [vmem:[%s1937_s9 + $0x300] sm:$0xff]  ;;  %v352_v42 = vld [vmem:[%s1937_s9 + $0x308] sm:$0xff] }
  0x3f   : > { %840 = vadd.xlane.f32.xlu1 %v839_v41  ;;  %v877_v60 = vsel %vm727_vm0, %v596_v50, 0.0  ;;  %v523_v61 = vmul.f32 %v1930_v9, %v277_v45  ;;  %v524_v62 = vmul.f32 %v1932_v10, %v278_v46  ;;  %v617_v63 = vmul.f32 %v1926_v7, %v371_v47  ;;  %v353_v47 = vld [vmem:[%s1937_s9 + $0x310] sm:$0xff] }
  0x40   : > { %801 = vadd.xlane.f32.xlu0 %v800_v53  ;;  %v911_v3 = vadd.f32 %v910_v48, %v909_v54  ;;  %v876_v4 = vadd.f32 %v875_v55, %v595_v49  ;;  %v756_v5 = vadd.f32 %v522_v56, %v521_v51  ;;  %v618_v6 = vmul.f32 %v1928_v8, %v372_v52  ;;  %v354_v48 = vld [vmem:[%s1937_s9 + $0x318] sm:$0xff]  ;;  %v399_v49 = vld [vmem:[%s1937_s9 + $0x480] sm:$0xff]  ;;  %v400_v54 = vld [vmem:[%s1937_s9 + $0x488] sm:$0xff] }
  0x41   : > { %v758_v14 = vsel %vm727_vm0, %v524_v62, 0.0  ;;  %v619_v15 = vmul.f32 %v1930_v9, %v373_v57  ;;  %v620_v16 = vmul.f32 %v1932_v10, %v374_v58  ;;  %v573_v17 = vmul.f32 %v1926_v7, %v327_v59  ;;  %v401_v59 = vld [vmem:[%s1937_s9 + $0x490] sm:$0xff] }
  0x42   : > { %v878_v19 = vadd.f32 %v877_v60, %v876_v4  ;;  %v757_v20 = vadd.f32 %v756_v5, %v523_v61  ;;  %v914_v21 = vadd.f32 %v618_v6, %v617_v63  ;;  %v574_v22 = vmul.f32 %v1928_v8, %v328_v2  ;;  %v402_v60 = vld [vmem:[%s1937_s9 + $0x498] sm:$0xff]  ;;  %v395_v61 = vld [vmem:[%s1937_s9 + $0x460] sm:$0xff]  ;;  %v396_v4 = vld [vmem:[%s1937_s9 + $0x468] sm:$0xff] }
  0x43   : > { %912 = vadd.xlane.f32.xlu1 %v911_v3  ;;  %v916_v26 = vsel %vm727_vm0, %v620_v16, 0.0  ;;  %v575_v27 = vmul.f32 %v1930_v9, %v329_v11  ;;  %v576_v28 = vmul.f32 %v1932_v10, %v330_v12  ;;  %v549_v29 = vmul.f32 %v1926_v7, %v303_v13  ;;  %v397_v13 = vld [vmem:[%s1937_s9 + $0x470] sm:$0xff] }
  0x44   : > { %879 = vadd.xlane.f32.xlu0 %v878_v19  ;;  %v759_v31 = vadd.f32 %v758_v14, %v757_v20  ;;  %v915_v32 = vadd.f32 %v914_v21, %v619_v15  ;;  %v842_v33 = vadd.f32 %v574_v22, %v573_v17  ;;  %v550_v34 = vmul.f32 %v1928_v8, %v304_v18  ;;  %v398_v14 = vld [vmem:[%s1937_s9 + $0x478] sm:$0xff]  ;;  %v307_v15 = vld [vmem:[%s1937_s9 + $0x1a0] sm:$0xf]  ;;  %v308_v20 = vld [vmem:[%s1937_s9 + $0x1a8] sm:$0xf] }
  0x45   : > { %v844_v38 = vsel %vm727_vm0, %v576_v28, 0.0  ;;  %v551_v39 = vmul.f32 %v1930_v9, %v305_v23  ;;  %v552_v40 = vmul.f32 %v1932_v10, %v306_v24  ;;  %v621_v41 = vmul.f32 %v1926_v7, %v375_v25  ;;  %v309_v25 = vld [vmem:[%s1937_s9 + $0x1b0] sm:$0xf] }
  0x46   : > { %v917_v43 = vadd.f32 %v916_v26, %v915_v32  ;;  %v843_v44 = vadd.f32 %v842_v33, %v575_v27  ;;  %v803_v45 = vadd.f32 %v550_v34, %v549_v29  ;;  %v622_v46 = vmul.f32 %v1928_v8, %v376_v30  ;;  %v310_v26 = vld [vmem:[%s1937_s9 + $0x1b8] sm:$0xf] }
  0x47   : > { %760 = vadd.xlane.f32.xlu1 %v759_v31  ;;  %v805_v50 = vsel %vm727_vm0, %v552_v40, 0.0  ;;  %v623_v51 = vmul.f32 %v1930_v9, %v377_v35  ;;  %v624_v52 = vmul.f32 %v1932_v10, %v378_v36  ;;  %v597_v53 = vmul.f32 %v1926_v7, %v351_v37  ;;  %v279_v31 = vld [vmem:[%s1937_s9 + $0xc0] sm:$0xf]  ;;  %v280_v36 = vld [vmem:[%s1937_s9 + $0xc8] sm:$0xf] }
  0x48   : > { %918 = vadd.xlane.f32.xlu0 %v917_v43  ;;  %v845_v55 = vadd.f32 %v844_v38, %v843_v44  ;;  %v804_v56 = vadd.f32 %v803_v45, %v551_v39  ;;  %v920_v57 = vadd.f32 %v622_v46, %v621_v41  ;;  %v598_v58 = vmul.f32 %v1928_v8, %v352_v42  ;;  %v281_v41 = vld [vmem:[%s1937_s9 + $0xd0] sm:$0xf]  ;;  %v282_v42 = vld [vmem:[%s1937_s9 + $0xd8] sm:$0xf] }
  0x49   : > { %v922_v62 = vsel %vm727_vm0, %v624_v52, 0.0  ;;  %v599_v63 = vmul.f32 %v1930_v9, %v353_v47  ;;  %v600_v2 = vmul.f32 %v1932_v10, %v354_v48  ;;  %v645_v3 = vmul.f32 %v1926_v7, %v399_v49  ;;  %v355_v47 = vld [vmem:[%s1937_s9 + $0x320] sm:$0xff]  ;;  %v356_v48 = vld [vmem:[%s1937_s9 + $0x328] sm:$0xff] }
  0x4a   : > { %v806_v5 = vadd.f32 %v805_v50, %v804_v56  ;;  %v921_v6 = vadd.f32 %v920_v57, %v623_v51  ;;  %v881_v11 = vadd.f32 %v598_v58, %v597_v53  ;;  %v646_v12 = vmul.f32 %v1928_v8, %v400_v54  ;;  %v357_v53 = vld [vmem:[%s1937_s9 + $0x330] sm:$0xff]  ;;  %v358_v58 = vld [vmem:[%s1937_s9 + $0x338] sm:$0xff] }
  0x4b   : > { %846 = vadd.xlane.f32.xlu1 %v845_v55  ;;  %v883_v16 = vsel %vm727_vm0, %v600_v2, 0.0  ;;  %v647_v17 = vmul.f32 %v1930_v9, %v401_v59  ;;  %v648_v18 = vmul.f32 %v1932_v10, %v402_v60  ;;  %v641_v19 = vmul.f32 %v1926_v7, %v395_v61  ;;  %v331_v59 = vld [vmem:[%s1937_s9 + $0x260] sm:$0xff]  ;;  %v332_v2 = vld [vmem:[%s1937_s9 + $0x268] sm:$0xff] }
  0x4c   : > { %807 = vadd.xlane.f32.xlu0 %v806_v5  ;;  %v923_v21 = vadd.f32 %v922_v62, %v921_v6  ;;  %v882_v22 = vadd.f32 %v881_v11, %v599_v63  ;;  %v959_v23 = vadd.f32 %v646_v12, %v645_v3  ;;  %v642_v24 = vmul.f32 %v1928_v8, %v396_v4  ;;  %v333_v3 = vld [vmem:[%s1937_s9 + $0x270] sm:$0xff]  ;;  %v334_v4 = vld [vmem:[%s1937_s9 + $0x278] sm:$0xff] }
  0x4d   : > { %v961_v27 = vsel %vm727_vm0, %v648_v18, 0.0  ;;  %v643_v28 = vmul.f32 %v1930_v9, %v397_v13  ;;  %v644_v29 = vmul.f32 %v1932_v10, %v398_v14  ;;  %v553_v30 = vmul.f32 %v1926_v7, %v307_v15  ;;  %v403_v13 = vld [vmem:[%s1937_s9 + $0x4a0] sm:$0xff]  ;;  %v404_v14 = vld [vmem:[%s1937_s9 + $0x4a8] sm:$0xff] }
  0x4e   : > { %v884_v32 = vadd.f32 %v883_v16, %v882_v22  ;;  %v960_v33 = vadd.f32 %v959_v23, %v647_v17  ;;  %v953_v34 = vadd.f32 %v642_v24, %v641_v19  ;;  %v554_v35 = vmul.f32 %v1928_v8, %v308_v20  ;;  %v405_v19 = vld [vmem:[%s1937_s9 + $0x4b0] sm:$0xff]  ;;  %v406_v24 = vld [vmem:[%s1937_s9 + $0x4b8] sm:$0xff] }
  0x4f   : > { %924 = vadd.xlane.f32.xlu1 %v923_v21  ;;  %v955_v37 = vsel %vm727_vm0, %v644_v29, 0.0  ;;  %v555_v38 = vmul.f32 %v1930_v9, %v309_v25  ;;  %v556_v39 = vmul.f32 %v1932_v10, %v310_v26  ;;  %v809_v40 = vsel %vm762_vm1, %v553_v30, 0.0  ;;  %v379_v25 = vld [vmem:[%s1937_s9 + $0x3e0] sm:$0xff]  ;;  %v380_v30 = vld [vmem:[%s1937_s9 + $0x3e8] sm:$0xff] }
  0x50   : > { %885 = vadd.xlane.f32.xlu0 %v884_v32  ;;  %v962_v43 = vadd.f32 %v961_v27, %v960_v33  ;;  %v954_v44 = vadd.f32 %v953_v34, %v643_v28  ;;  %v810_v45 = vsel %vm762_vm1, %v554_v35, 0.0  ;;  %v525_v46 = vmul.f32 %v1926_v7, %v279_v31  ;;  %v381_v31 = vld [vmem:[%s1937_s9 + $0x3f0] sm:$0xff]  ;;  %v382_v32 = vld [vmem:[%s1937_s9 + $0x3f8] sm:$0xff] }
  0x51   : > { %v811_v49 = vadd.f32 %v810_v45, %v809_v40  ;;  %v812_v50 = vsel %vm762_vm1, %v555_v38, 0.0  ;;  %v814_v51 = vsel %vm768_vm2, %v556_v39, 0.0  ;;  %v526_v52 = vmul.f32 %v1928_v8, %v280_v36  ;;  %v428_v38 = vld [vmem:[%s1937_s9 + $0x568] sm:$0xff] }
  0x52   : > { %v956_v54 = vadd.f32 %v955_v37, %v954_v44  ;;  %v527_v55 = vmul.f32 %v1930_v9, %v281_v41  ;;  %v528_v56 = vmul.f32 %v1932_v10, %v282_v42  ;;  %v763_v57 = vsel %vm762_vm1, %v525_v46, 0.0  ;;  %v427_v37 = vld [vmem:[%s1937_s9 + $0x560] sm:$0xff] }
  0x53   : > { %963 = vadd.xlane.f32.xlu1 %v962_v43  ;;  %v813_v60 = vadd.f32 %v812_v50, %v811_v49  ;;  %v764_v61 = vsel %vm762_vm1, %v526_v52, 0.0  ;;  %v601_v62 = vmul.f32 %v1926_v7, %v355_v47  ;;  %v602_v63 = vmul.f32 %v1928_v8, %v356_v48  ;;  %v429_v43 = vld [vmem:[%s1937_s9 + $0x570] sm:$0xff]  ;;  %v430_v48 = vld [vmem:[%s1937_s9 + $0x578] sm:$0xff]  ;;  %v423_v49 = vld [vmem:[%s1937_s9 + $0x540] sm:$0xff] }
  0x54   : > { %957 = vadd.xlane.f32.xlu0 %v956_v54  ;;  %v765_v5 = vadd.f32 %v764_v61, %v763_v57  ;;  %v766_v6 = vsel %vm762_vm1, %v527_v55, 0.0  ;;  %v769_v11 = vsel %vm768_vm2, %v528_v56, 0.0  ;;  %v603_v12 = vmul.f32 %v1930_v9, %v357_v53  ;;  %v424_v54 = vld [vmem:[%s1937_s9 + $0x548] sm:$0xff]  ;;  %v425_v55 = vld [vmem:[%s1937_s9 + $0x550] sm:$0xff]  ;;  %v426_v56 = vld [vmem:[%s1937_s9 + $0x558] sm:$0xff] }
  0x55   : > { %v815_v15 = vadd.f32 %v814_v51, %v813_v60  ;;  %v604_v16 = vmul.f32 %v1932_v10, %v358_v58  ;;  %v887_v17 = vadd.f32 %v602_v63, %v601_v62  ;;  %v577_v18 = vmul.f32 %v1926_v7, %v331_v59  ;;  %v359_v61 = vld [vmem:[%s1937_s9 + $0x340] sm:$0xff]  ;;  %v360_v62 = vld [vmem:[%s1937_s9 + $0x348] sm:$0xff] }
  0x56   : > { %v767_v20 = vadd.f32 %v766_v6, %v765_v5  ;;  %v578_v21 = vmul.f32 %v1928_v8, %v332_v2  ;;  %v579_v22 = vmul.f32 %v1930_v9, %v333_v3  ;;  %v580_v23 = vmul.f32 %v1932_v10, %v334_v4  ;;  %v361_v5 = vld [vmem:[%s1937_s9 + $0x350] sm:$0xff] }
  0x57   : > { %816 = vadd.xlane.f32.xlu1 %v815_v15  ;;  %v888_v26 = vadd.f32 %v887_v17, %v603_v12  ;;  %v889_v27 = vsel %vm727_vm0, %v604_v16, 0.0  ;;  %v649_v28 = vmul.f32 %v1926_v7, %v403_v13  ;;  %v650_v29 = vmul.f32 %v1928_v8, %v404_v14  ;;  %v362_v14 = vld [vmem:[%s1937_s9 + $0x358] sm:$0xff]  ;;  %v335_v15 = vld [vmem:[%s1937_s9 + $0x280] sm:$0xf]  ;;  %v336_v16 = vld [vmem:[%s1937_s9 + $0x288] sm:$0xf] }
  0x58   : > { %v770_v33 = vadd.f32 %v769_v11, %v767_v20  ;;  %v848_v34 = vadd.f32 %v578_v21, %v577_v18  ;;  %v850_v35 = vsel %vm727_vm0, %v580_v23, 0.0  ;;  %v651_v36 = vmul.f32 %v1930_v9, %v405_v19  ;;  %v337_v21 = vld [vmem:[%s1937_s9 + $0x290] sm:$0xf] }
  0x59   : > { %v890_v39 = vadd.f32 %v889_v27, %v888_v26  ;;  %v652_v40 = vmul.f32 %v1932_v10, %v406_v24  ;;  %v965_v41 = vadd.f32 %v650_v29, %v649_v28  ;;  %v625_v42 = vmul.f32 %v1926_v7, %v379_v25  ;;  %v407_v27 = vld [vmem:[%s1937_s9 + $0x4c0] sm:$0xff] }
  0x5a   : > { %771 = vadd.xlane.f32.xlu0 %v770_v33  ;;  %v849_v44 = vadd.f32 %v848_v34, %v579_v22  ;;  %v626_v45 = vmul.f32 %v1928_v8, %v380_v30  ;;  %v627_v46 = vmul.f32 %v1930_v9, %v381_v31  ;;  %v628_v47 = vmul.f32 %v1932_v10, %v382_v32  ;;  %v338_v22 = vld [vmem:[%s1937_s9 + $0x298] sm:$0xf] }
  0x5b   : > { %891 = vadd.xlane.f32.xlu1 %v890_v39  ;;  %v966_v50 = vadd.f32 %v965_v41, %v651_v36  ;;  %v967_v51 = vsel %vm727_vm0, %v652_v40, 0.0  ;;  %v673_v52 = vmul.f32 %v1926_v7, %v427_v37  ;;  %v674_v53 = vmul.f32 %v1928_v8, %v428_v38  ;;  %v408_v36 = vld [vmem:[%s1937_s9 + $0x4c8] sm:$0xff]  ;;  %v409_v37 = vld [vmem:[%s1937_s9 + $0x4d0] sm:$0xff]  ;;  %v410_v38 = vld [vmem:[%s1937_s9 + $0x4d8] sm:$0xff] }
  0x5c   : > { %v851_v57 = vadd.f32 %v850_v35, %v849_v44  ;;  %v926_v58 = vadd.f32 %v626_v45, %v625_v42  ;;  %v928_v59 = vsel %vm727_vm0, %v628_v47, 0.0  ;;  %v675_v60 = vmul.f32 %v1930_v9, %v429_v43  ;;  %v383_v43 = vld [vmem:[%s1937_s9 + $0x400] sm:$0xff]  ;;  %v384_v44 = vld [vmem:[%s1937_s9 + $0x408] sm:$0xff]  ;;  %v385_v45 = vld [vmem:[%s1937_s9 + $0x410] sm:$0xff] }
  0x5d   : > { %v968_v63 = vadd.f32 %v967_v51, %v966_v50  ;;  %v676_v2 = vmul.f32 %v1932_v10, %v430_v48  ;;  %v1004_v3 = vadd.f32 %v674_v53, %v673_v52  ;;  %v669_v4 = vmul.f32 %v1926_v7, %v423_v49  ;;  %v386_v50 = vld [vmem:[%s1937_s9 + $0x418] sm:$0xff]  ;;  %v451_v51 = vld [vmem:[%s1937_s9 + $0x620] sm:$0xff] }
  0x5e   : > { %852 = vadd.xlane.f32.xlu0 %v851_v57  ;;  %v927_v6 = vadd.f32 %v926_v58, %v627_v46  ;;  %v670_v11 = vmul.f32 %v1928_v8, %v424_v54  ;;  %v671_v12 = vmul.f32 %v1930_v9, %v425_v55  ;;  %v672_v13 = vmul.f32 %v1932_v10, %v426_v56  ;;  %v452_v56 = vld [vmem:[%s1937_s9 + $0x628] sm:$0xff]  ;;  %v453_v57 = vld [vmem:[%s1937_s9 + $0x630] sm:$0xff] }
  0x5f   : > { %969 = vadd.xlane.f32.xlu1 %v968_v63  ;;  %v1005_v17 = vadd.f32 %v1004_v3, %v675_v60  ;;  %v1006_v18 = vsel %vm727_vm0, %v676_v2, 0.0  ;;  %v605_v19 = vmul.f32 %v1926_v7, %v359_v61  ;;  %v606_v20 = vmul.f32 %v1928_v8, %v360_v62  ;;  %v454_v62 = vld [vmem:[%s1937_s9 + $0x638] sm:$0xff] }
  0x60   : > { %v929_v23 = vadd.f32 %v928_v59, %v927_v6  ;;  %v998_v24 = vadd.f32 %v670_v11, %v669_v4  ;;  %v1000_v25 = vsel %vm727_vm0, %v672_v13, 0.0  ;;  %v607_v26 = vmul.f32 %v1930_v9, %v361_v5  ;;  %v431_v5 = vld [vmem:[%s1937_s9 + $0x580] sm:$0xff]  ;;  %v432_v6 = vld [vmem:[%s1937_s9 + $0x588] sm:$0xff] }
  0x61   : > { %v1007_v28 = vadd.f32 %v1006_v18, %v1005_v17  ;;  %v608_v29 = vmul.f32 %v1932_v10, %v362_v14  ;;  %v893_v30 = vadd.f32 %v606_v20, %v605_v19  ;;  %v581_v31 = vmul.f32 %v1926_v7, %v335_v15  ;;  %v433_v15 = vld [vmem:[%s1937_s9 + $0x590] sm:$0xff] }
  0x62   : > { %930 = vadd.xlane.f32.xlu0 %v929_v23  ;;  %v999_v32 = vadd.f32 %v998_v24, %v671_v12  ;;  %v582_v33 = vmul.f32 %v1928_v8, %v336_v16  ;;  %v583_v34 = vmul.f32 %v1930_v9, %v337_v21  ;;  %v584_v35 = vmul.f32 %v1932_v10, %v338_v22  ;;  %v434_v16 = vld [vmem:[%s1937_s9 + $0x598] sm:$0xff]  ;;  %v363_v21 = vld [vmem:[%s1937_s9 + $0x360] sm:$0xf] }
  0x63   : > { %1008 = vadd.xlane.f32.xlu1 %v1007_v28  ;;  %v894_v39 = vadd.f32 %v893_v30, %v607_v26  ;;  %v895_v40 = vsel %vm727_vm0, %v608_v29, 0.0  ;;  %v854_v41 = vsel %vm762_vm1, %v581_v31, 0.0  ;;  %v653_v42 = vmul.f32 %v1926_v7, %v407_v27  ;;  %v364_v26 = vld [vmem:[%s1937_s9 + $0x368] sm:$0xf]  ;;  %v365_v27 = vld [vmem:[%s1937_s9 + $0x370] sm:$0xf] }
  0x64   : > { %v1001_v46 = vadd.f32 %v1000_v25, %v999_v32  ;;  %v855_v47 = vsel %vm762_vm1, %v582_v33, 0.0  ;;  %v857_v48 = vsel %vm762_vm1, %v583_v34, 0.0  ;;  %v859_v49 = vsel %vm768_vm2, %v584_v35, 0.0  ;;  %v366_v28 = vld [vmem:[%s1937_s9 + $0x378] sm:$0xf]  ;;  %v455_v33 = vld [vmem:[%s1937_s9 + $0x640] sm:$0xff] }
  0x65   : > { %v896_v52 = vadd.f32 %v895_v40, %v894_v39  ;;  %v856_v53 = vadd.f32 %v855_v47, %v854_v41  ;;  %v654_v54 = vmul.f32 %v1928_v8, %v408_v36  ;;  %v655_v55 = vmul.f32 %v1930_v9, %v409_v37 }
  0x66   : > { %1002 = vadd.xlane.f32.xlu0 %v1001_v46  ;;  %v656_v58 = vmul.f32 %v1932_v10, %v410_v38  ;;  %v629_v59 = vmul.f32 %v1926_v7, %v383_v43  ;;  %v630_v60 = vmul.f32 %v1928_v8, %v384_v44  ;;  %v631_v61 = vmul.f32 %v1930_v9, %v385_v45  ;;  %v456_v38 = vld [vmem:[%s1937_s9 + $0x648] sm:$0xff]  ;;  %v457_v43 = vld [vmem:[%s1937_s9 + $0x650] sm:$0xff]  ;;  %v458_v44 = vld [vmem:[%s1937_s9 + $0x658] sm:$0xff] }
  0x67   : > { %897 = vadd.xlane.f32.xlu1 %v896_v52  ;;  %v858_v63 = vadd.f32 %v857_v48, %v856_v53  ;;  %v971_v2 = vadd.f32 %v654_v54, %v653_v42  ;;  %v632_v3 = vmul.f32 %v1932_v10, %v386_v50  ;;  %v697_v4 = vmul.f32 %v1926_v7, %v451_v51  ;;  %v412_v50 = vld [vmem:[%s1937_s9 + $0x4e8] sm:$0xff]  ;;  %v413_v51 = vld [vmem:[%s1937_s9 + $0x4f0] sm:$0xff] }
  0x68   : > { %v973_v11 = vsel %vm727_vm0, %v656_v58, 0.0  ;;  %v932_v12 = vadd.f32 %v630_v60, %v629_v59  ;;  %v698_v13 = vmul.f32 %v1928_v8, %v452_v56  ;;  %v699_v14 = vmul.f32 %v1930_v9, %v453_v57  ;;  %v414_v56 = vld [vmem:[%s1937_s9 + $0x4f8] sm:$0xff]  ;;  %v387_v57 = vld [vmem:[%s1937_s9 + $0x420] sm:$0xff] }
  0x69   : > { %v860_v17 = vadd.f32 %v859_v49, %v858_v63  ;;  %v972_v18 = vadd.f32 %v971_v2, %v655_v55  ;;  %v934_v19 = vsel %vm727_vm0, %v632_v3, 0.0  ;;  %v700_v20 = vmul.f32 %v1932_v10, %v454_v62  ;;  %v411_v49 = vld [vmem:[%s1937_s9 + $0x4e0] sm:$0xff]  ;;  %v388_v62 = vld [vmem:[%s1937_s9 + $0x428] sm:$0xff]  ;;  %v389_v63 = vld [vmem:[%s1937_s9 + $0x430] sm:$0xff] }
  0x6a   : > { %v933_v22 = vadd.f32 %v932_v12, %v631_v61  ;;  %v1043_v23 = vadd.f32 %v698_v13, %v697_v4  ;;  %v677_v24 = vmul.f32 %v1926_v7, %v431_v5  ;;  %v678_v25 = vmul.f32 %v1928_v8, %v432_v6  ;;  %v390_v6 = vld [vmem:[%s1937_s9 + $0x438] sm:$0xff] }
  0x6b   : > { %861 = vadd.xlane.f32.xlu0 %v860_v17  ;;  %v974_v29 = vadd.f32 %v973_v11, %v972_v18  ;;  %v1045_v30 = vsel %vm727_vm0, %v700_v20, 0.0  ;;  %v679_v31 = vmul.f32 %v1930_v9, %v433_v15  ;;  %v680_v32 = vmul.f32 %v1932_v10, %v434_v16  ;;  %v459_v11 = vld [vmem:[%s1937_s9 + $0x660] sm:$0xff]  ;;  %v460_v16 = vld [vmem:[%s1937_s9 + $0x668] sm:$0xff] }
  0x6c   : > { %v935_v34 = vadd.f32 %v934_v19, %v933_v22  ;;  %v1044_v35 = vadd.f32 %v1043_v23, %v699_v14  ;;  %v1010_v36 = vadd.f32 %v678_v25, %v677_v24  ;;  %v609_v37 = vmul.f32 %v1926_v7, %v363_v21  ;;  %v461_v21 = vld [vmem:[%s1937_s9 + $0x670] sm:$0xff]  ;;  %v462_v22 = vld [vmem:[%s1937_s9 + $0x678] sm:$0xff]  ;;  %v435_v23 = vld [vmem:[%s1937_s9 + $0x5a0] sm:$0xff] }
  0x6d   : > { %975 = vadd.xlane.f32.xlu1 %v974_v29  ;;  %v1012_v39 = vsel %vm727_vm0, %v680_v32, 0.0  ;;  %v610_v40 = vmul.f32 %v1928_v8, %v364_v26  ;;  %v611_v41 = vmul.f32 %v1930_v9, %v365_v27  ;;  %v612_v42 = vmul.f32 %v1932_v10, %v366_v28  ;;  %v436_v28 = vld [vmem:[%s1937_s9 + $0x5a8] sm:$0xff] }
  0x6e   : > { %v1046_v45 = vadd.f32 %v1045_v30, %v1044_v35  ;;  %v1011_v46 = vadd.f32 %v1010_v36, %v679_v31  ;;  %v899_v47 = vsel %vm762_vm1, %v609_v37, 0.0  ;;  %v701_v48 = vmul.f32 %v1926_v7, %v455_v33  ;;  %v437_v33 = vld [vmem:[%s1937_s9 + $0x5b0] sm:$0xff]  ;;  %v415_v35 = vld [vmem:[%s1937_s9 + $0x500] sm:$0xff] }
  0x6f   : > { %936 = vadd.xlane.f32.xlu0 %v935_v34  ;;  %v900_v52 = vsel %vm762_vm1, %v610_v40, 0.0  ;;  %v902_v53 = vsel %vm762_vm1, %v611_v41, 0.0  ;;  %v904_v54 = vsel %vm768_vm2, %v612_v42, 0.0  ;;  %v702_v55 = vmul.f32 %v1928_v8, %v456_v38  ;;  %v438_v34 = vld [vmem:[%s1937_s9 + $0x5b8] sm:$0xff]  ;;  %v416_v40 = vld [vmem:[%s1937_s9 + $0x508] sm:$0xff] }
  0x70   : > { %v1013_v58 = vadd.f32 %v1012_v39, %v1011_v46  ;;  %v901_v59 = vadd.f32 %v900_v52, %v899_v47  ;;  %v703_v60 = vmul.f32 %v1930_v9, %v457_v43  ;;  %v704_v61 = vmul.f32 %v1932_v10, %v458_v44  ;;  %v418_v46 = vld [vmem:[%s1937_s9 + $0x518] sm:$0xff]  ;;  %v391_v47 = vld [vmem:[%s1937_s9 + $0x440] sm:$0xf]  ;;  %v392_v52 = vld [vmem:[%s1937_s9 + $0x448] sm:$0xf] }
  0x71   : > { %1047 = vadd.xlane.f32.xlu1 %v1046_v45  ;;  %v1049_v2 = vadd.f32 %v702_v55, %v701_v48  ;;  %v657_v3 = vmul.f32 %v1926_v7, %v411_v49  ;;  %v658_v4 = vmul.f32 %v1928_v8, %v412_v50  ;;  %v659_v5 = vmul.f32 %v1930_v9, %v413_v51  ;;  %v417_v45 = vld [vmem:[%s1937_s9 + $0x510] sm:$0xff] }
  0x72   : > { %v903_v12 = vadd.f32 %v902_v53, %v901_v59  ;;  %v1051_v13 = vsel %vm727_vm0, %v704_v61, 0.0  ;;  %v660_v14 = vmul.f32 %v1932_v10, %v414_v56  ;;  %v633_v15 = vmul.f32 %v1926_v7, %v387_v57  ;;  %v393_v57 = vld [vmem:[%s1937_s9 + $0x450] sm:$0xf] }
  0x73   : > { %1014 = vadd.xlane.f32.xlu0 %v1013_v58  ;;  %v1050_v17 = vadd.f32 %v1049_v2, %v703_v60  ;;  %v977_v18 = vadd.f32 %v658_v4, %v657_v3  ;;  %v634_v19 = vmul.f32 %v1928_v8, %v388_v62  ;;  %v635_v20 = vmul.f32 %v1930_v9, %v389_v63  ;;  %v394_v58 = vld [vmem:[%s1937_s9 + $0x458] sm:$0xf]  ;;  %v463_v63 = vld [vmem:[%s1937_s9 + $0x680] sm:$0xff] }
  0x74   : > { %v905_v24 = vadd.f32 %v904_v54, %v903_v12  ;;  %v979_v25 = vsel %vm727_vm0, %v660_v14, 0.0  ;;  %v636_v26 = vmul.f32 %v1932_v10, %v390_v6  ;;  %v705_v27 = vmul.f32 %v1926_v7, %v459_v11  ;;  %v464_v6 = vld [vmem:[%s1937_s9 + $0x688] sm:$0xff] }
  0x75   : > { %v1052_v29 = vadd.f32 %v1051_v13, %v1050_v17  ;;  %v978_v30 = vadd.f32 %v977_v18, %v659_v5  ;;  %v938_v31 = vadd.f32 %v634_v19, %v633_v15  ;;  %v706_v32 = vmul.f32 %v1928_v8, %v460_v16  ;;  %v465_v15 = vld [vmem:[%s1937_s9 + $0x690] sm:$0xff]  ;;  %v466_v16 = vld [vmem:[%s1937_s9 + $0x698] sm:$0xff]  ;;  %v439_v17 = vld [vmem:[%s1937_s9 + $0x5c0] sm:$0xff] }
  0x76   : > { %906 = vadd.xlane.f32.xlu1 %v905_v24  ;;  %v940_v36 = vsel %vm727_vm0, %v636_v26, 0.0  ;;  %v707_v37 = vmul.f32 %v1930_v9, %v461_v21  ;;  %v708_v38 = vmul.f32 %v1932_v10, %v462_v22  ;;  %v681_v39 = vmul.f32 %v1926_v7, %v435_v23  ;;  %v440_v22 = vld [vmem:[%s1937_s9 + $0x5c8] sm:$0xff]  ;;  %v441_v23 = vld [vmem:[%s1937_s9 + $0x5d0] sm:$0xff] }
  0x77   : > { %1053 = vadd.xlane.f32.xlu0 %v1052_v29  ;;  %v980_v41 = vadd.f32 %v979_v25, %v978_v30  ;;  %v939_v42 = vadd.f32 %v938_v31, %v635_v20  ;;  %v1055_v43 = vadd.f32 %v706_v32, %v705_v27  ;;  %v682_v44 = vmul.f32 %v1928_v8, %v436_v28  ;;  %v442_v28 = vld [vmem:[%s1937_s9 + $0x5d8] sm:$0xff]  ;;  %v443_v29 = vld [vmem:[%s1937_s9 + $0x5e0] sm:$0xff]  ;;  %v444_v30 = vld [vmem:[%s1937_s9 + $0x5e8] sm:$0xff] }
  0x78   : > { %v1057_v48 = vsel %vm727_vm0, %v708_v38, 0.0  ;;  %v683_v49 = vmul.f32 %v1930_v9, %v437_v33  ;;  %v684_v50 = vmul.f32 %v1932_v10, %v438_v34  ;;  %v661_v51 = vmul.f32 %v1926_v7, %v415_v35  ;;  %v445_v35 = vld [vmem:[%s1937_s9 + $0x5f0] sm:$0xff] }
  0x79   : > { %v941_v53 = vadd.f32 %v940_v36, %v939_v42  ;;  %v1056_v54 = vadd.f32 %v1055_v43, %v707_v37  ;;  %v1016_v55 = vadd.f32 %v682_v44, %v681_v39  ;;  %v662_v56 = vmul.f32 %v1928_v8, %v416_v40  ;;  %v446_v40 = vld [vmem:[%s1937_s9 + $0x5f8] sm:$0xff] }
  0x7a   : > { %981 = vadd.xlane.f32.xlu1 %v980_v41  ;;  %v1018_v59 = vsel %vm727_vm0, %v684_v50, 0.0  ;;  %v663_v60 = vmul.f32 %v1930_v9, %v417_v45  ;;  %v664_v61 = vmul.f32 %v1932_v10, %v418_v46  ;;  %v637_v62 = vmul.f32 %v1926_v7, %v391_v47  ;;  %v419_v41 = vld [vmem:[%s1937_s9 + $0x520] sm:$0xf]  ;;  %v420_v46 = vld [vmem:[%s1937_s9 + $0x528] sm:$0xf] }
  0x7b   : > { %942 = vadd.xlane.f32.xlu0 %v941_v53  ;;  %v1058_v2 = vadd.f32 %v1057_v48, %v1056_v54  ;;  %v1017_v3 = vadd.f32 %v1016_v55, %v683_v49  ;;  %v983_v4 = vadd.f32 %v662_v56, %v661_v51  ;;  %v638_v5 = vmul.f32 %v1928_v8, %v392_v52  ;;  %v421_v47 = vld [vmem:[%s1937_s9 + $0x530] sm:$0xf]  ;;  %v422_v52 = vld [vmem:[%s1937_s9 + $0x538] sm:$0xf] }
  0x7c   : > { %v985_v11 = vsel %vm727_vm0, %v664_v61, 0.0  ;;  %v639_v12 = vmul.f32 %v1930_v9, %v393_v57  ;;  %v640_v13 = vmul.f32 %v1932_v10, %v394_v58  ;;  %v944_v14 = vsel %vm762_vm1, %v637_v62, 0.0  ;;  %v447_v57 = vld [vmem:[%s1937_s9 + $0x600] sm:$0xf]  ;;  %v448_v62 = vld [vmem:[%s1937_s9 + $0x608] sm:$0xf] }
  0x7d   : > { %v1019_v18 = vadd.f32 %v1018_v59, %v1017_v3  ;;  %v984_v19 = vadd.f32 %v983_v4, %v663_v60  ;;  %v945_v20 = vsel %vm762_vm1, %v638_v5, 0.0  ;;  %v709_v21 = vmul.f32 %v1926_v7, %v463_v63  ;;  %v467_v63 = vld [vmem:[%s1937_s9 + $0x6a0] sm:$0xff] }
  0x7e   : > { %1059 = vadd.xlane.f32.xlu1 %v1058_v2  ;;  %v946_v24 = vadd.f32 %v945_v20, %v944_v14  ;;  %v947_v25 = vsel %vm762_vm1, %v639_v12, 0.0  ;;  %v949_v26 = vsel %vm768_vm2, %v640_v13, 0.0  ;;  %v710_v27 = vmul.f32 %v1928_v8, %v464_v6  ;;  %v449_v6 = vld [vmem:[%s1937_s9 + $0x610] sm:$0xf] }
  0x7f   : > { %1020 = vadd.xlane.f32.xlu0 %v1019_v18  ;;  %v986_v31 = vadd.f32 %v985_v11, %v984_v19  ;;  %v711_v32 = vmul.f32 %v1930_v9, %v465_v15  ;;  %v712_v33 = vmul.f32 %v1932_v10, %v466_v16  ;;  %v685_v34 = vmul.f32 %v1926_v7, %v439_v17  ;;  %v450_v11 = vld [vmem:[%s1937_s9 + $0x618] sm:$0xf]  ;;  %v468_v16 = vld [vmem:[%s1937_s9 + $0x6a8] sm:$0xff]  ;;  %v469_v17 = vld [vmem:[%s1937_s9 + $0x6b0] sm:$0xff] }
  0x80   : > { %v948_v36 = vadd.f32 %v947_v25, %v946_v24  ;;  %v1061_v37 = vadd.f32 %v710_v27, %v709_v21  ;;  %v686_v38 = vmul.f32 %v1928_v8, %v440_v22  ;;  %v687_v39 = vmul.f32 %v1930_v9, %v441_v23  ;;  %v470_v22 = vld [vmem:[%s1937_s9 + $0x6b8] sm:$0xff]  ;;  %v471_v27 = vld [vmem:[%s1937_s9 + $0x6c0] sm:$0xff] }
  0x81   : > { %v1063_v42 = vsel %vm727_vm0, %v712_v33, 0.0  ;;  %v688_v43 = vmul.f32 %v1932_v10, %v442_v28  ;;  %v689_v44 = vmul.f32 %v1926_v7, %v443_v29  ;;  %v690_v45 = vmul.f32 %v1928_v8, %v444_v30  ;;  %v472_v28 = vld [vmem:[%s1937_s9 + $0x6c8] sm:$0xff]  ;;  %v473_v33 = vld [vmem:[%s1937_s9 + $0x6d0] sm:$0xff] }
  0x82   : > { %987 = vadd.xlane.f32.xlu1 %v986_v31  ;;  %v950_v48 = vadd.f32 %v949_v26, %v948_v36  ;;  %v1062_v49 = vadd.f32 %v1061_v37, %v711_v32  ;;  %v1022_v50 = vadd.f32 %v686_v38, %v685_v34  ;;  %v691_v51 = vmul.f32 %v1930_v9, %v445_v35  ;;  %v474_v34 = vld [vmem:[%s1937_s9 + $0x6d8] sm:$0xff] }
  0x83   : > { %v1024_v53 = vsel %vm727_vm0, %v688_v43, 0.0  ;;  %v692_v54 = vmul.f32 %v1932_v10, %v446_v40  ;;  %v1028_v55 = vadd.f32 %v690_v45, %v689_v44  ;;  %v665_v56 = vmul.f32 %v1926_v7, %v419_v41  ;;  %v476_v40 = vld [vmem:[%s1937_s9 + $0x6e8] sm:$0xf]  ;;  %v477_v45 = vld [vmem:[%s1937_s9 + $0x6f0] sm:$0xf] }
  0x84   : > { %951 = vadd.xlane.f32.xlu0 %v950_v48  ;;  %v1064_v58 = vadd.f32 %v1063_v42, %v1062_v49  ;;  %v1023_v59 = vadd.f32 %v1022_v50, %v687_v39  ;;  %v666_v60 = vmul.f32 %v1928_v8, %v420_v46  ;;  %v667_v61 = vmul.f32 %v1930_v9, %v421_v47  ;;  %v475_v39 = vld [vmem:[%s1937_s9 + $0x6e0] sm:$0xf]  ;;  %v478_v46 = vld [vmem:[%s1937_s9 + $0x6f8] sm:$0xf]  ;;  %s1648_s9 = sshll.u32 %s228_s8, 3 }
  0x85   : > { %v1029_v2 = vadd.f32 %v1028_v55, %v691_v51  ;;  %v1030_v3 = vsel %vm727_vm0, %v692_v54, 0.0  ;;  %v668_v4 = vmul.f32 %v1932_v10, %v422_v52  ;;  %v989_v5 = vsel %vm762_vm1, %v665_v56, 0.0  ;;  %s230_s13 = scalar_lea.vmem [#allocation3], %s1648_s9 }
  0x86   : > { %1065 = vadd.xlane.f32.xlu1 %v1064_v58  ;;  %v1025_v12 = vadd.f32 %v1024_v53, %v1023_v59  ;;  %v990_v13 = vsel %vm762_vm1, %v666_v60, 0.0  ;;  %v992_v14 = vsel %vm762_vm1, %v667_v61, 0.0  ;;  %v693_v15 = vmul.f32 %v1926_v7, %v447_v57  ;;  %s1557_s14 = sshll.u32 %s230_s13, 4  ;;  %s2646_s14 = int_to_ptr.vmem [resolvable:$true] %s1557_s14 }
  0x87   : > { %v1031_v18 = vadd.f32 %v1030_v3, %v1029_v2  ;;  %v991_v19 = vadd.f32 %v990_v13, %v989_v5  ;;  %v994_v20 = vsel %vm768_vm2, %v668_v4, 0.0  ;;  %v694_v21 = vmul.f32 %v1928_v8, %v448_v62  ;;  %v1453_v5 = vld [vmem:[%s2693_s2 + $0x8] sm:$0xff]  ;;  %v1455_v13 = vld [vmem:[%s2693_s2 + $0x18] sm:$0xff]  ;;  %s1751_s29 = scalar_lea.vmem %s2646_s14, 128  ;;  %p1758_p1 = scmp.lt.s32.totalorder %s2646_s14, %s1756_s30 }
  0x88   : > { %1026 = vadd.xlane.f32.xlu0 %v1025_v12  ;;  %v695_v23 = vmul.f32 %v1930_v9, %v449_v6  ;;  %v696_v24 = vmul.f32 %v1932_v10, %v450_v11  ;;  %v1034_v25 = vsel %vm762_vm1, %v693_v15, 0.0  ;;  %v713_v26 = vmul.f32 %v1926_v7, %v467_v63  ;;  %v1454_v12 = vld [vmem:[%s2693_s2 + $0x10] sm:$0xff]  ;;  %v1456_v15 = vld [vmem:[%s2693_s2 + $0x20] sm:$0xff]  ;;  %p1752_p12 = scmp.ne.s32.totalorder %s2646_s14, %s1751_s29  ;;  %p1759_p2 = scmp.lt.s32.totalorder %s1757_s5, %s1751_s29 }
  0x89   : > { %v993_v29 = vadd.f32 %v992_v14, %v991_v19  ;;  %v1035_v30 = vsel %vm762_vm1, %v694_v21, 0.0  ;;  %v714_v31 = vmul.f32 %v1928_v8, %v468_v16  ;;  %v715_v32 = vmul.f32 %v1930_v9, %v469_v17  ;;  %v1457_v16 = vld [vmem:[%s2693_s2 + $0x28] sm:$0xff]  ;;  %v1458_v21 = vld [vmem:[%s2693_s2 + $0x30] sm:$0xf] }
  0x8a   : > { %1032 = vadd.xlane.f32.xlu1 %v1031_v18  ;;  %v1036_v35 = vadd.f32 %v1035_v30, %v1034_v25  ;;  %v1037_v36 = vsel %vm762_vm1, %v695_v23, 0.0  ;;  %v1039_v37 = vsel %vm768_vm2, %v696_v24, 0.0  ;;  %v716_v38 = vmul.f32 %v1932_v10, %v470_v22  ;;  %p1753_p13 = pnand %p1752_p12, %p1900_p4  ;;  %p1760_p3 = por %p1759_p2, %p1758_p1 }
  0x8b   : > { %v995_v41 = vadd.f32 %v994_v20, %v993_v29  ;;  %v1067_v42 = vadd.f32 %v714_v31, %v713_v26  ;;  %v717_v43 = vmul.f32 %v1926_v7, %v471_v27  ;;  %v718_v44 = vmul.f32 %v1928_v8, %v472_v28 }
  0x8c   : > { %v1038_v47 = vadd.f32 %v1037_v36, %v1036_v35  ;;  %v1069_v48 = vsel %vm727_vm0, %v716_v38, 0.0  ;;  %v719_v49 = vmul.f32 %v1930_v9, %v473_v33  ;;  %v720_v50 = vmul.f32 %v1932_v10, %v474_v34  ;;  %p1754_p0 = pneg %p1753_p13 }
  0x8d   : > { %996 = vadd.xlane.f32.xlu0 %v995_v41  ;;  %v1068_v51 = vadd.f32 %v1067_v42, %v715_v32  ;;  %v1073_v52 = vadd.f32 %v718_v44, %v717_v43  ;;  %v721_v53 = vmul.f32 %v1926_v7, %v475_v39  ;;  %v722_v54 = vmul.f32 %v1928_v8, %v476_v40 }
  0x8e   : > { %v1040_v55 = vadd.f32 %v1039_v37, %v1038_v47  ;;  %v1075_v56 = vsel %vm727_vm0, %v720_v50, 0.0  ;;  %v723_v57 = vmul.f32 %v1930_v9, %v477_v45  ;;  %v724_v58 = vmul.f32 %v1932_v10, %v478_v46  ;;  %v1452_v10 = vld [vmem:[%s2693_s2] sm:$0xff]  ;;  %p1761_p5 = pnand %p1760_p3, %p1754_p0 }
  0x8f   : > { %v1070_v59 = vadd.f32 %v1069_v48, %v1068_v51  ;;  %v1074_v60 = vadd.f32 %v1073_v52, %v719_v49  ;;  %v1079_v61 = vsel %vm762_vm1, %v721_v53, 0.0  ;;  %v1080_v62 = vsel %vm762_vm1, %v722_v54, 0.0 }
  0x90   : > { %1041 = vadd.xlane.f32.xlu1 %v1040_v55  ;;  %v1081_v63 = vadd.f32 %v1080_v62, %v1079_v61  ;;  %v1082_v2 = vsel %vm762_vm1, %v723_v57, 0.0  ;;  %v1084_v8 = vsel %vm768_vm2, %v724_v58, 0.0  ;;  %v1831_v9 = vmov 0.0  }
  0x91   : > { %1071 = vadd.xlane.f32.xlu0 %v1070_v59  ;;  %v1076_v7 = vadd.f32 %v1075_v56, %v1074_v60  ;;  %253 = vst.msk [vmem:[#allocation2] sm:$0xff] %vm252_vm3, %v1831_v9  ;;  %v1684_v6 = vpack.c.bf16 %v1453_v5, %v1452_v10  ;;  %v1832_v11 = vmov 0.0|0.0   ;;  %v1687_v14 = vpack.c.bf16 %v1455_v13, %v1454_v12 }
  0x92   : > { %v1083_v3 = vadd.f32 %v1082_v2, %v1081_v63  ;;  %1683 = vmatprep.subr.bf16.mxu0 %v1832_v11  ;;  %1680 = vmatprep.mubr.msk.f32.mxu0 %vm1833_vm4, %v1831_v9  ;;  %v2487_v17 = vand.u32 127, %v481_v0  ;;  %v1690_v18 = vpack.c.bf16 %v1457_v16, %v1456_v15  ;;  %vm1440_vm0 = vcmask 1046534  }
  0x93   : > { %1685 = vmatpush3.bf16.msra.mxu0 %v1684_v6 }
  0x94   : > { %v1085_v4 = vadd.f32 %v1084_v8, %v1083_v3  ;;  %1686 = vmatprep.subr.bf16.mxu0 %v1832_v11  ;;  %v2491_v19 = vsub.s32 %v2487_v17, %v1917_v1  ;;  %v1150_v20 = vadd.s32 4294967288, %v2487_v17  ;;  %v1157_v25 = vadd.s32 4294967280, %v2487_v17 }
  0x95   : > { %1077 = vadd.xlane.f32.xlu0 %v1076_v7  ;;  %v1164_v37 = vadd.s32 4294967272, %v2487_v17  ;;  %v1171_v50 = vadd.s32 4294967264, %v2487_v17 }
  0x96   : > { %1086 = vadd.xlane.f32.xlu1 %v1085_v4  ;;  %v2499_v24 = vsub.s32 %v1150_v20, %v1917_v1  ;;  %v2506_v30 = vsub.s32 %v1157_v25, %v1917_v1 }
  0x97   : > { %1688 = vmatpush3.bf16.msra.mxu0 %v1687_v14  ;;  %v2518_v44 = vsub.s32 %v1164_v37, %v1917_v1  ;;  %v2529_v57 = vsub.s32 %v1171_v50, %v1917_v1 }
  0x98   : > { %1689 = vmatprep.subr.bf16.mxu0 %v1832_v11 }
  0x9b   : > { %1691 = vmatpush3.bf16.msra.mxu0 %v1690_v18 }
  0x9c   : > { %1678 = vmatprep.subr.mxu0 %v1831_v9  ;;  %v1178_v9 = vadd.s32 4294967256, %v2487_v17 }
  0x9e   : > { %v2544_v14 = vsub.s32 %v1178_v9, %v1917_v1 }
  0x9f   : > { %1679 = vmatpush3.msk.msra.mxu0 %vm762_vm1, %v1458_v21  ;;  %vm1442_vm1 = vcmask 1047559  }
  0xb0   : > { %v778_v22 = vpop.xlane.xlu1 %777 }
  0xb1   : > { %v1195_v23 = vrot.slane %v778_v22, %v2491_v19  ;;  %v731_v0 = vpop.xlane.xlu0 %730 }
  0xb2   : > { %v1149_v26 = vrot.slane %v731_v0, %v2491_v19 }
  0xb4   : > { %v784_v27 = vpop.xlane.xlu1 %783 }
  0xb5   : > { %v1199_v28 = vrot.slane %v784_v27, %v2499_v24  ;;  %v737_v29 = vpop.xlane.xlu0 %736 }
  0xb6   : > { %v1154_v31 = vrot.slane %v737_v29, %v2499_v24 }
  0xb7   : > { %v1200_v32 = vsel %vm1155_vm5, %v1199_v28, %v1195_v23 }
  0xb8   : > { %v1156_v33 = vsel %vm1155_vm5, %v1154_v31, %v1149_v26  ;;  %v790_v34 = vpop.xlane.xlu1 %789 }
  0xb9   : > { %v1204_v35 = vrot.slane %v790_v34, %v2506_v30  ;;  %v743_v36 = vpop.xlane.xlu0 %742 }
  0xba   : > { %v1161_v38 = vrot.slane %v743_v36, %v2506_v30 }
  0xbb   : > { %v1205_v39 = vsel %vm1162_vm6, %v1204_v35, %v1200_v32  ;;  %v1185_v35 = vadd.s32 4294967248, %v2487_v17 }
  0xbc   : > { %v1163_v40 = vsel %vm1162_vm6, %v1161_v38, %v1156_v33  ;;  %v829_v41 = vpop.xlane.xlu1 %828 }
  0xbd   : > { %v1233_v42 = vrot.slane %v829_v41, %v2499_v24  ;;  %v823_v43 = vpop.xlane.xlu0 %822  ;;  %v2566_v41 = vsub.s32 %v1185_v35, %v1917_v1 }
  0xbe   : > { %v1229_v45 = vrot.slane %v823_v43, %v2491_v19 }
  0xc0   : > { %v1234_v46 = vsel %vm1155_vm5, %v1233_v42, %v1229_v45  ;;  %v796_v47 = vpop.xlane.xlu1 %795 }
  0xc1   : > { %v1209_v48 = vrot.slane %v796_v47, %v2518_v44  ;;  %v749_v49 = vpop.xlane.xlu0 %748 }
  0xc2   : > { %v1168_v51 = vrot.slane %v749_v49, %v2518_v44 }
  0xc3   : > { %v1210_v52 = vsel %vm1169_vm7, %v1209_v48, %v1205_v39 }
  0xc4   : > { %v1170_v53 = vsel %vm1169_vm7, %v1168_v51, %v1163_v40  ;;  %v868_v54 = vpop.xlane.xlu1 %867 }
  0xc5   : > { %v1263_v55 = vrot.slane %v868_v54, %v2491_v19  ;;  %v835_v56 = vpop.xlane.xlu0 %834 }
  0xc6   : > { %v1238_v58 = vrot.slane %v835_v56, %v2506_v30 }
  0xc8   : > { %v1239_v59 = vsel %vm1162_vm6, %v1238_v58, %v1234_v46  ;;  %v755_v60 = vpop.xlane.xlu1 %754 }
  0xc9   : > { %v1175_v61 = vrot.slane %v755_v60, %v2529_v57  ;;  %v874_v62 = vpop.xlane.xlu0 %873 }
  0xca   : > { %v1267_v63 = vrot.slane %v874_v62, %v2499_v24 }
  0xcb   : > { %v1177_v2 = vsel %vm1176_vm8, %v1175_v61, %v1170_v53 }
  0xcc   : > { %v1268_v7 = vsel %vm1155_vm5, %v1267_v63, %v1263_v55  ;;  %v841_v8 = vpop.xlane.xlu1 %840 }
  0xcd   : > { %v1243_v3 = vrot.slane %v841_v8, %v2518_v44  ;;  %v802_v4 = vpop.xlane.xlu0 %801 }
  0xce   : > { %v1214_v10 = vrot.slane %v802_v4, %v2529_v57 }
  0xcf   : > { %v1244_v5 = vsel %vm1169_vm7, %v1243_v3, %v1239_v59 }
  0xd0   : > { %v1215_v6 = vsel %vm1176_vm8, %v1214_v10, %v1210_v52  ;;  %v913_v11 = vpop.xlane.xlu1 %912 }
  0xd1   : > { %v1297_v12 = vrot.slane %v913_v11, %v2491_v19  ;;  %v880_v13 = vpop.xlane.xlu0 %879 }
  0xd2   : > { %v1272_v15 = vrot.slane %v880_v13, %v2506_v30 }
  0xd4   : > { %v1273_v16 = vsel %vm1162_vm6, %v1272_v15, %v1268_v7  ;;  %v761_v18 = vpop.xlane.xlu1 %760 }
  0xd5   : > { %v1182_v20 = vrot.slane %v761_v18, %v2544_v14  ;;  %v919_v21 = vpop.xlane.xlu0 %918 }
  0xd6   : > { %v1301_v22 = vrot.slane %v919_v21, %v2499_v24 }
  0xd7   : > { %v1184_v23 = vsel %vm1183_vm9, %v1182_v20, %v1177_v2 }
  0xd8   : > { %v1302_v0 = vsel %vm1155_vm5, %v1301_v22, %v1297_v12  ;;  %v847_v25 = vpop.xlane.xlu1 %846 }
  0xd9   : > { %v1248_v26 = vrot.slane %v847_v25, %v2529_v57  ;;  %v808_v27 = vpop.xlane.xlu0 %807 }
  0xda   : > { %v1219_v28 = vrot.slane %v808_v27, %v2544_v14 }
  0xdb   : > { %v1249_v29 = vsel %vm1176_vm8, %v1248_v26, %v1244_v5 }
  0xdc   : > { %v1220_v31 = vsel %vm1183_vm9, %v1219_v28, %v1215_v6  ;;  %v925_v32 = vpop.xlane.xlu1 %924 }
  0xdd   : > { %v1306_v33 = vrot.slane %v925_v32, %v2506_v30  ;;  %v886_v34 = vpop.xlane.xlu0 %885 }
  0xde   : > { %v1277_v36 = vrot.slane %v886_v34, %v2518_v44 }
  0xdf   : > { %v1307_v37 = vsel %vm1162_vm6, %v1306_v33, %v1302_v0 }
  0xe0   : > { %v1278_v38 = vsel %vm1169_vm7, %v1277_v36, %v1273_v16  ;;  %v2561_v39 = vpop.xlane.xlu1 %963 }
  0xe1   : > { %v2563_v40 = vpop.xlane.xlu0 %957 }
  0xe2   : > { %v1331_v32 = vrot.slane %v2563_v40, %v2491_v19 }
  0xe4   : > { %v817_v42 = vpop.xlane.xlu1 %816 }
  0xe5   : > { %v1224_v43 = vrot.slane %v817_v42, %v2566_v41 }
  0xe7   : > { %v1225_v45 = vsel %vm1190_vm10, %v1224_v43, %v1220_v31  ;;  %v772_v17 = vpop.xlane.xlu0 %771  ;;  %v1335_v31 = vrot.slane %v2561_v39, %v2499_v24 }
  0xe8   : > { %v1189_v46 = vrot.slane %v772_v17, %v2566_v41  ;;  %v892_v47 = vpop.xlane.xlu1 %891 }
  0xe9   : > { %v1282_v48 = vrot.slane %v892_v47, %v2529_v57  ;;  %v1336_v39 = vsel %vm1155_vm5, %v1335_v31, %v1331_v32 }
  0xea   : > { %v1191_v49 = vsel %vm1190_vm10, %v1189_v46, %v1184_v23 }
  0xeb   : > { %v1431_v50 = vsel %vm1430_vm11, %v1225_v45, %v1191_v49  ;;  %v1283_v51 = vsel %vm1176_vm8, %v1282_v48, %v1278_v38  ;;  %v853_v1 = vpop.xlane.xlu0 %852 }
  0xec   : > { %v1253_v52 = vrot.slane %v853_v1, %v2544_v14  ;;  %v970_v53 = vpop.xlane.xlu1 %969 }
  0xed   : > { %v1340_v34 = vrot.slane %v970_v53, %v2506_v30 }
  0xee   : > { %v1254_v54 = vsel %vm1183_vm9, %v1253_v52, %v1249_v29 }
  0xef   : > { %v931_v55 = vpop.xlane.xlu0 %930  ;;  %v1341_v46 = vsel %vm1162_vm6, %v1340_v34, %v1336_v39 }
  0xf0   : > { %v1311_v56 = vrot.slane %v931_v55, %v2518_v44  ;;  %v1009_v58 = vpop.xlane.xlu1 %1008 }
  0xf1   : > { %v1369_v38 = vrot.slane %v1009_v58, %v2499_v24 }
  0xf2   : > { %v1312_v59 = vsel %vm1169_vm7, %v1311_v56, %v1307_v37 }
  0xf3   : > { %v1003_v60 = vpop.xlane.xlu0 %1002 }
  0xf4   : > { %v898_v61 = vpop.xlane.xlu1 %897  ;;  %v1365_v42 = vrot.slane %v1003_v60, %v2491_v19 }
  0xf5   : > { %v1287_v62 = vrot.slane %v898_v61, %v2544_v14 }
  0xf7   : > { %v1288_v63 = vsel %vm1183_vm9, %v1287_v62, %v1283_v51  ;;  %v1370_v51 = vsel %vm1155_vm5, %v1369_v38, %v1365_v42 }
  0xf8   : > { %v862_v2 = vpop.xlane.xlu0 %861 }
  0xf9   : > { %v1258_v7 = vrot.slane %v862_v2, %v2566_v41 }
  0xfa   : > { %v976_v8 = vpop.xlane.xlu1 %975 }
  0xfb   : > { %v1259_v3 = vsel %vm1190_vm10, %v1258_v7, %v1254_v54  ;;  %v1345_v37 = vrot.slane %v976_v8, %v2518_v44 }
  0xfc   : > { %v1433_v4 = vsel %vm1432_vm12, %v1259_v3, %v1431_v50  ;;  %v937_v9 = vpop.xlane.xlu0 %936 }
  0xfd   : > { %v1316_v10 = vrot.slane %v937_v9, %v2529_v57  ;;  %v1346_v48 = vsel %vm1169_vm7, %v1345_v37, %v1341_v46 }
  0xfe   : > { %v2583_v5 = vpop.xlane.xlu1 %1047 }
  0xff   : > { %v1317_v6 = vsel %vm1176_vm8, %v1316_v10, %v1312_v59  ;;  %v1399_v8 = vrot.slane %v2583_v5, %v2491_v19 }
 0x100   : > { %v1015_v11 = vpop.xlane.xlu0 %1014 }
 0x101   : > { %v1374_v17 = vrot.slane %v1015_v11, %v2506_v30 }
 0x103   : > { %v907_v12 = vpop.xlane.xlu1 %906  ;;  %v1375_v54 = vsel %vm1162_vm6, %v1374_v17, %v1370_v51 }
 0x104   : > { %v1292_v13 = vrot.slane %v907_v12, %v2566_v41  ;;  %v1054_v15 = vpop.xlane.xlu0 %1053 }
 0x105   : > { %v1403_v56 = vrot.slane %v1054_v15, %v2499_v24  ;;  %v254_v15 = vld [vmem:[#allocation2] sm:$0xff] }
 0x106   : > { %v1293_v16 = vsel %vm1190_vm10, %v1292_v13, %v1288_v63 }
 0x107   : > { %v1435_v18 = vsel %vm1434_vm13, %v1293_v16, %v1433_v4  ;;  %v982_v20 = vpop.xlane.xlu1 %981  ;;  %v1404_v10 = vsel %vm1155_vm5, %v1403_v56, %v1399_v8 }
 0x108   : > { %v943_v21 = vpop.xlane.xlu0 %942  ;;  %v1350_v43 = vrot.slane %v982_v20, %v2529_v57 }
 0x109   : > { %v1321_v22 = vrot.slane %v943_v21, %v2544_v14 }
 0x10a   : > { %v1351_v1 = vsel %vm1176_vm8, %v1350_v43, %v1346_v48 }
 0x10b   : > { %v1322_v23 = vsel %vm1183_vm9, %v1321_v22, %v1317_v6  ;;  %v1060_v0 = vpop.xlane.xlu1 %1059 }
 0x10c   : > { %v1021_v25 = vpop.xlane.xlu0 %1020  ;;  %v1408_v61 = vrot.slane %v1060_v0, %v2506_v30 }
 0x10d   : > { %v1379_v47 = vrot.slane %v1021_v25, %v2518_v44 }
 0x10e   : > { %v1409_v6 = vsel %vm1162_vm6, %v1408_v61, %v1404_v10 }
 0x10f   : > { %v988_v26 = vpop.xlane.xlu1 %987  ;;  %v1380_v58 = vsel %vm1169_vm7, %v1379_v47, %v1375_v54 }
 0x110   : > { %v1355_v40 = vrot.slane %v988_v26, %v2544_v14 }
 0x111   : > { %v952_v27 = vpop.xlane.xlu0 %951 }
 0x112   : > { %v1326_v28 = vrot.slane %v952_v27, %v2566_v41  ;;  %v1356_v55 = vsel %vm1183_vm9, %v1355_v40, %v1351_v1 }
 0x113   : > { %v1066_v29 = vpop.xlane.xlu1 %1065 }
 0x114   : > { %v1327_v33 = vsel %vm1190_vm10, %v1326_v28, %v1322_v23  ;;  %v1413_v3 = vrot.slane %v1066_v29, %v2518_v44 }
 0x115   : > { %v1437_v35 = vsel %vm1436_vm14, %v1327_v33, %v1435_v18  ;;  %v1027_v36 = vpop.xlane.xlu0 %1026 }
 0x116   : > { %v1384_v49 = vrot.slane %v1027_v36, %v2529_v57  ;;  %v1414_v12 = vsel %vm1169_vm7, %v1413_v3, %v1409_v6 }
 0x117   : > { %v1033_v45 = vpop.xlane.xlu1 %1032 }
 0x118   : > { %v1389_v52 = vrot.slane %v1033_v45, %v2544_v14  ;;  %v1385_v62 = vsel %vm1176_vm8, %v1384_v49, %v1380_v58 }
 0x11a   : > { %v997_v50 = vpop.xlane.xlu0 %996  ;;  %v1390_v24 = vsel %vm1183_vm9, %v1389_v52, %v1385_v62 }
 0x11b   : > { %v1360_v53 = vrot.slane %v997_v50, %v2566_v41 }
 0x11d   : > { %v1361_v59 = vsel %vm1190_vm10, %v1360_v53, %v1356_v55  ;;  %v1042_v60 = vpop.xlane.xlu1 %1041 }
 0x11e   : > { %v1439_v63 = vsel %vm1438_vm15, %v1361_v59, %v1437_v35  ;;  %v1394_v2 = vrot.slane %v1042_v60, %v2566_v41  ;;  %v1072_v7 = vpop.xlane.xlu0 %1071 }
 0x11f   : > { %v1418_v9 = vrot.slane %v1072_v7, %v2529_v57 }
 0x120   : > { %v1395_v4 = vsel %vm1190_vm10, %v1394_v2, %v1390_v24 }
 0x121   : > { %v1441_v30 = vsel %vm1440_vm0, %v1395_v4, %v1439_v63  ;;  %v1419_v44 = vsel %vm1176_vm8, %v1418_v9, %v1414_v12 }
 0x122   : > { %v1078_v11 = vpop.xlane.xlu0 %1077 }
 0x123   : > { %v1423_v13 = vrot.slane %v1078_v11, %v2544_v14  ;;  %v1087_v19 = vpop.xlane.xlu1 %1086  ;;  %v1651_v14 = vld [vmem:[%s2694_s3] ss:$0 sm:$0xff] }
 0x124   : > { %v1428_v5 = vrot.slane %v1087_v19, %v2566_v41 }
 0x125   : > { %v1424_v57 = vsel %vm1183_vm9, %v1423_v13, %v1419_v44 }
 0x126   : > { %v1429_v16 = vsel %vm1190_vm10, %v1428_v5, %v1424_v57 }
 0x127   : > { %v1443_v18 = vsel %vm1442_vm1, %v1429_v16, %v1441_v30 }
 0x128   : > { %v1445_v20 = vadd.f32 %v1443_v18, %v254_v15 }
 0x12a   : > { %1447 = vst.msk [vmem:[#allocation2] sm:$0xff] %vm252_vm3, %v1445_v20 }
 0x131   : > { %v1451_v21 = vld [vmem:[#allocation2] sm:$0xff] }
 0x132   : > { %1681 = vmatmul.mubr.msk.f32.vlgmr.msra.gmra.mrb[0].mxu0 %vm252_vm3, %v1451_v21 }
 0x205   : > { %v1538_v41 = vpop.f32.mrb[0].mxu0 }
 0x206   : > { %v1539_v22 = vadd.f32 %v1651_v14, %v1538_v41  ;;  %v1682_v23 = vpop.f32.mrb[1].mxu0 }
 0x208   : > { %1542 = vst [vmem:[%s230_s13] sm:$0xff] %v1539_v22 }
 0x209   : > { %1764 = shalt.err (!%p1761_p5)
}
 0x20a   : > { %s1765_s6 = scalar_lea.hbm %s2644_s24, 128  ;;  %s1769_s9 = scalar_lea.hbm %s2695_s4, 384 }
 0x20b   : > { %p1766_p6 = scmp.ne.s32.totalorder %s2644_s24, %s1765_s6  ;;  %p1770_p10 = scmp.lt.u32.totalorder %s2644_s24, %s2695_s4 }
 0x20c   : > { %p1771_p11 = scmp.lt.u32.totalorder %s1769_s9, %s1765_s6  ;;  %p1773_p13 = scmp.lt.u32.totalorder %s1765_s6, %s2644_s24 }
 0x20d   : > { %p1767_p7 = pnand %p1766_p6, %p1900_p4 }
 0x20e   : > { %p1772_p12 = por %p1771_p11, %p1770_p10 }
 0x20f   : > { %p1768_p9 = pneg %p1767_p7 }
 0x210   : > { %p1774_p0 = por %p1773_p13, %p1772_p12 }
 0x212   : > { %p1775_p1 = pnand %p1774_p0, %p1768_p9 }
 0x214   : > { %1778 = shalt.err (!%p1775_p1)
}
 0x215   : > { %1693 = dma.vmem_to_hbm [thread:$0]  (%p1900_p4), %s2646_s14, 128, %s2644_s24, %s1544_s26  }
 0x216 PF: > { %p1699_p2 = scmp.ge.s32.totalorder %s1829_s20, 2  ;;  %s1569_s12 = sand.u32 1, %s1809_s15  }
 0x217   : > { %s1570_s13 = scalar_lea.sflag [#allocation4], %s1569_s12 }
 0x218   : > { %p1696_p3 = pnand %p1699_p2, %p1907_p8 }
 0x21a   : > { %1804 = dma.done.wait (!%p1696_p3), %s1570_s13, 128  }
 0x21b   : > { %1806 = vsyncadd (!%p1696_p3), %s1570_s13, 4294967168  ;;  %s17_s20 = sadd.s32 1, %s1829_s20   ;;  %s2698_s15 = smov %s1813_s16 }
 0x21c   : > { %p14_p5 = scmp.ge.s32.totalorder %s17_s20, 5   ;;  %s2699_s16 = smov %s1817_s17 }
 0x21d   : > { %s2700_s17 = smov %s1913_s28  ;;  %s2701_s18 = smov %s1825_s19 }
 0x21e   : > { %s2702_s19 = smov %s2704_s23  ;;  %16 = sbr.rel (!%p14_p5) target bundleno = 4 (0x4), region = 82 }
 0x225   :  { %1575 = vsyncpa [#allocation4], 1 }
 0x226   :  { %1577 = vsyncpa [#allocation4 + $0x1], 1 }

</bundles_post_ra>
